<compile_context>
chip_gen: v7x
topology: tpu7x:2x2x1
jax: 0.10.0
libtpu: 0.0.40
codegen_flags: <defaults>
</compile_context>

<pallas_src>
import functools
import math

import jax
import jax.numpy as jnp
from jax import lax
from jax.experimental import pallas as pl
from jax.experimental.pallas import tpu as pltpu


# ----------------------------------------------------------------------------
# tiling helpers
# ----------------------------------------------------------------------------

def _choose_tile(n, cap, align):
    """Largest tile <= cap that divides n and is a multiple of `align`;
    falls back to the full extent (always a legal Pallas block)."""
    if n <= cap:
        return n
    t = (cap // align) * align
    while t >= align:
        if n % t == 0:
            return t
        t -= align
    return n


def _parallel(n_axes):
    return pltpu.CompilerParams(dimension_semantics=("parallel",) * n_axes)


# ----------------------------------------------------------------------------
# Pallas kernels
# ----------------------------------------------------------------------------

def _linear_kernel(x_ref, w_ref, b_ref, o_ref, *, activation):
    # x: [tm, K] f32, w: [K, tn] bf16, b: [1, tn] f32 -> o: [tm, tn] f32
    y = jnp.dot(x_ref[...].astype(jnp.bfloat16), w_ref[...],
                preferred_element_type=jnp.float32)
    y = y + b_ref[...]
    if activation == "relu":
        y = jnp.maximum(y, 0.0)
    o_ref[...] = y


def linear(x2d, w, b, activation=None):
    """Tiled [M,K] @ [K,N] + b.  Grid over (M-tiles, N-tiles), K resident."""
    M, K = x2d.shape
    N = w.shape[1]
    tm = _choose_tile(M, 256, 8)
    tn = _choose_tile(N, 512, 128)
    return pl.pallas_call(
        functools.partial(_linear_kernel, activation=activation),
        out_shape=jax.ShapeDtypeStruct((M, N), jnp.float32),
        grid=(M // tm, N // tn),
        in_specs=[
            pl.BlockSpec((tm, K), lambda i, j: (i, 0)),
            pl.BlockSpec((K, tn), lambda i, j: (0, j)),
            pl.BlockSpec((1, tn), lambda i, j: (0, j)),
        ],
        out_specs=pl.BlockSpec((tm, tn), lambda i, j: (i, j)),
        compiler_params=_parallel(2),
    )(x2d, w, b.reshape(1, N))


def _proj_add_ln_kernel(x_ref, w_ref, b_ref, r_ref, g_ref, be_ref, o_ref, *, eps):
    # fused: out-projection + bias + residual add + LayerNorm
    y = jnp.dot(x_ref[...].astype(jnp.bfloat16), w_ref[...],
                preferred_element_type=jnp.float32)
    y = y + b_ref[...] + r_ref[...]
    mean = jnp.mean(y, axis=-1, keepdims=True)
    var = jnp.mean((y - mean) ** 2, axis=-1, keepdims=True)
    o_ref[...] = (y - mean) * lax.rsqrt(var + eps) * g_ref[...] + be_ref[...]


def proj_add_layernorm(x2d, w, b, resid2d, gamma, beta, eps=1e-5):
    M, K = x2d.shape
    D = w.shape[1]
    tm = _choose_tile(M, 256, 8)
    return pl.pallas_call(
        functools.partial(_proj_add_ln_kernel, eps=eps),
        out_shape=jax.ShapeDtypeStruct((M, D), jnp.float32),
        grid=(M // tm,),
        in_specs=[
            pl.BlockSpec((tm, K), lambda i: (i, 0)),
            pl.BlockSpec((K, D), lambda i: (0, 0)),
            pl.BlockSpec((1, D), lambda i: (0, 0)),
            pl.BlockSpec((tm, D), lambda i: (i, 0)),
            pl.BlockSpec((1, D), lambda i: (0, 0)),
            pl.BlockSpec((1, D), lambda i: (0, 0)),
        ],
        out_specs=pl.BlockSpec((tm, D), lambda i: (i, 0)),
        compiler_params=_parallel(1),
    )(x2d, w, b.reshape(1, D), resid2d, gamma.reshape(1, D), beta.reshape(1, D))


def _ffn_add_ln_kernel(x_ref, w1_ref, b1_ref, w2_ref, b2_ref, g_ref, be_ref,
                       o_ref, *, eps):
    # fused: Linear + ReLU + Linear + residual add + LayerNorm
    x = x_ref[...]
    h = jnp.dot(x.astype(jnp.bfloat16), w1_ref[...],
                preferred_element_type=jnp.float32) + b1_ref[...]
    h = jnp.maximum(h, 0.0)
    y = jnp.dot(h.astype(jnp.bfloat16), w2_ref[...],
                preferred_element_type=jnp.float32) + b2_ref[...]
    y = y + x                                   # residual
    mean = jnp.mean(y, axis=-1, keepdims=True)
    var = jnp.mean((y - mean) ** 2, axis=-1, keepdims=True)
    o_ref[...] = (y - mean) * lax.rsqrt(var + eps) * g_ref[...] + be_ref[...]


def ffn_add_layernorm(x2d, w1, b1, w2, b2, gamma, beta, eps=1e-5):
    M, D = x2d.shape
    PF = w1.shape[1]
    tm = _choose_tile(M, 256, 8)
    return pl.pallas_call(
        functools.partial(_ffn_add_ln_kernel, eps=eps),
        out_shape=jax.ShapeDtypeStruct((M, D), jnp.float32),
        grid=(M // tm,),
        in_specs=[
            pl.BlockSpec((tm, D), lambda i: (i, 0)),
            pl.BlockSpec((D, PF), lambda i: (0, 0)),
            pl.BlockSpec((1, PF), lambda i: (0, 0)),
            pl.BlockSpec((PF, D), lambda i: (0, 0)),
            pl.BlockSpec((1, D), lambda i: (0, 0)),
            pl.BlockSpec((1, D), lambda i: (0, 0)),
            pl.BlockSpec((1, D), lambda i: (0, 0)),
        ],
        out_specs=pl.BlockSpec((tm, D), lambda i: (i, 0)),
        compiler_params=_parallel(1),
    )(x2d, w1, b1.reshape(1, PF), w2, b2.reshape(1, D),
      gamma.reshape(1, D), beta.reshape(1, D))


def _mha_body(q_ref, k_ref, v_ref, m_ref, scale):
    # per-batch tile: q [H,Lq,hd], k/v [H,Lk,hd], m [Lq,Lk] additive (0/-1e10)
    q = q_ref[...].astype(jnp.bfloat16)
    k = k_ref[...].astype(jnp.bfloat16)
    v = v_ref[...].astype(jnp.bfloat16)
    # scores via dot_general contracting last dims (no explicit K transpose)
    energy = lax.dot_general(q, k, (((2,), (2,)), ((0,), (0,))),
                             preferred_element_type=jnp.float32)  # [H,Lq,Lk]
    energy = energy * scale + m_ref[...][None, :, :]
    e_max = jnp.max(energy, axis=-1, keepdims=True)
    p = jnp.exp(energy - e_max)
    denom = jnp.sum(p, axis=-1, keepdims=True)
    attn = p * pl.reciprocal(denom)             # exact; keeps row sums == 1
    ctx = lax.dot_general(attn.astype(jnp.bfloat16), v,
                          (((2,), (1,)), ((0,), (0,))),
                          preferred_element_type=jnp.float32)     # [H,Lq,hd]
    return ctx, attn


def _mha_kernel(q_ref, k_ref, v_ref, m_ref, ctx_ref, *, scale):
    ctx, _ = _mha_body(q_ref, k_ref, v_ref, m_ref, scale)
    ctx_ref[...] = ctx


def _mha_attn_kernel(q_ref, k_ref, v_ref, m_ref, ctx_ref, attn_ref, *, scale):
    ctx, attn = _mha_body(q_ref, k_ref, v_ref, m_ref, scale)
    ctx_ref[...] = ctx
    attn_ref[...] = attn


def scaled_dot_attention(q4, k4, v4, add_mask3, *, return_attn):
    # q4: [B,H,Lq,hd], k4/v4: [B,H,Lk,hd], add_mask3: [B,Lq,Lk] (0 / -1e10)
    B, H, Lq, hd = q4.shape
    Lk = k4.shape[2]
    scale = 1.0 / math.sqrt(hd)
    in_specs = [
        pl.BlockSpec((None, H, Lq, hd), lambda b: (b, 0, 0, 0)),
        pl.BlockSpec((None, H, Lk, hd), lambda b: (b, 0, 0, 0)),
        pl.BlockSpec((None, H, Lk, hd), lambda b: (b, 0, 0, 0)),
        pl.BlockSpec((None, Lq, Lk), lambda b: (b, 0, 0)),
    ]
    if return_attn:
        ctx, attn = pl.pallas_call(
            functools.partial(_mha_attn_kernel, scale=scale),
            out_shape=(jax.ShapeDtypeStruct((B, H, Lq, hd), jnp.float32),
                       jax.ShapeDtypeStruct((B, H, Lq, Lk), jnp.float32)),
            grid=(B,),
            in_specs=in_specs,
            out_specs=(pl.BlockSpec((None, H, Lq, hd), lambda b: (b, 0, 0, 0)),
                       pl.BlockSpec((None, H, Lq, Lk), lambda b: (b, 0, 0, 0))),
            compiler_params=_parallel(1),
        )(q4, k4, v4, add_mask3)
        return ctx, attn
    ctx = pl.pallas_call(
        functools.partial(_mha_kernel, scale=scale),
        out_shape=jax.ShapeDtypeStruct((B, H, Lq, hd), jnp.float32),
        grid=(B,),
        in_specs=in_specs,
        out_specs=pl.BlockSpec((None, H, Lq, hd), lambda b: (b, 0, 0, 0)),
        compiler_params=_parallel(1),
    )(q4, k4, v4, add_mask3)
    return ctx, None


# ----------------------------------------------------------------------------
# Transformer blocks built on the kernels
# ----------------------------------------------------------------------------

def self_attention_block(p, x, add_mask, n_heads, *, return_attn=False):
    B, L, D = x.shape
    hd = D // n_heads
    qkv = linear(x.reshape(B * L, D), p["wqkv"], p["bqkv"])     # fused Q|K|V
    qkv = qkv.reshape(B, L, 3, n_heads, hd).transpose(2, 0, 3, 1, 4)
    q, k, v = qkv[0], qkv[1], qkv[2]                            # [B,H,L,hd]
    ctx, attn = scaled_dot_attention(q, k, v, add_mask, return_attn=return_attn)
    ctx2d = ctx.transpose(0, 2, 1, 3).reshape(B * L, D)
    return ctx2d, attn


def cross_attention_block(p, x, enc, add_mask, n_heads, *, return_attn):
    B, Lq, D = x.shape
    Lk = enc.shape[1]
    hd = D // n_heads
    q = linear(x.reshape(B * Lq, D), p["wq"], p["bq"])
    q = q.reshape(B, Lq, n_heads, hd).transpose(0, 2, 1, 3)
    kv = linear(enc.reshape(B * Lk, D), p["wkv"], p["bkv"])     # fused K|V
    kv = kv.reshape(B, Lk, 2, n_heads, hd).transpose(2, 0, 3, 1, 4)
    k, v = kv[0], kv[1]
    ctx, attn = scaled_dot_attention(q, k, v, add_mask, return_attn=return_attn)
    ctx2d = ctx.transpose(0, 2, 1, 3).reshape(B * Lq, D)
    return ctx2d, attn


def encoder_layer(p, src, src_add_mask, n_heads):
    B, L, D = src.shape
    ctx2d, _ = self_attention_block(p["attn"], src, src_add_mask, n_heads)
    src = proj_add_layernorm(ctx2d, p["attn"]["wo"], p["attn"]["bo"],
                             src.reshape(B * L, D),
                             p["ln1_g"], p["ln1_b"]).reshape(B, L, D)
    src = ffn_add_layernorm(src.reshape(B * L, D),
                            p["ff"]["w1"], p["ff"]["b1"],
                            p["ff"]["w2"], p["ff"]["b2"],
                            p["ln2_g"], p["ln2_b"]).reshape(B, L, D)
    return src


def decoder_layer(p, trg, enc_src, trg_add_mask, src_add_mask, n_heads,
                  *, return_attn):
    B, L, D = trg.shape
    ctx2d, _ = self_attention_block(p["self_attn"], trg, trg_add_mask, n_heads)
    trg = proj_add_layernorm(ctx2d, p["self_attn"]["wo"], p["self_attn"]["bo"],
                             trg.reshape(B * L, D),
                             p["ln1_g"], p["ln1_b"]).reshape(B, L, D)
    ctx2d, attention = cross_attention_block(p["cross_attn"], trg, enc_src,
                                             src_add_mask, n_heads,
                                             return_attn=return_attn)
    trg = proj_add_layernorm(ctx2d, p["cross_attn"]["wo"], p["cross_attn"]["bo"],
                             trg.reshape(B * L, D),
                             p["ln2_g"], p["ln2_b"]).reshape(B, L, D)
    trg = ffn_add_layernorm(trg.reshape(B * L, D),
                            p["ff"]["w1"], p["ff"]["b1"],
                            p["ff"]["w2"], p["ff"]["b2"],
                            p["ln3_g"], p["ln3_b"]).reshape(B, L, D)
    return trg, attention


def encoder(p, src, src_add_mask, n_heads):
    L = src.shape[1]
    D = p["tok_emb"].shape[1]
    x = p["tok_emb"][src] * math.sqrt(D) + p["pos_emb"][:L][None, :, :]
    # dropout == identity (eval mode)
    for lp in p["layers"]:
        x = encoder_layer(lp, x, src_add_mask, n_heads)
    return x


def decoder(p, trg, enc_src, trg_add_mask, src_add_mask, n_heads):
    L = trg.shape[1]
    D = p["tok_emb"].shape[1]
    x = p["tok_emb"][trg] * math.sqrt(D) + p["pos_emb"][:L][None, :, :]
    n_layers = len(p["layers"])
    attention = None
    for idx, lp in enumerate(p["layers"]):
        # Only the last layer's cross-attention map is consumed -> only that
        # one writes the [B,H,Lq,Lk] probability tensor to HBM.
        x, attn = decoder_layer(lp, x, enc_src, trg_add_mask, src_add_mask,
                                n_heads, return_attn=(idx == n_layers - 1))
        if attn is not None:
            attention = attn
    B_, L_, D_ = x.shape
    V = p["fc_out_w"].shape[1]
    logits = linear(x.reshape(B_ * L_, D_),
                    p["fc_out_w"], p["fc_out_b"]).reshape(B_, L_, V)
    return logits, attention


# ----------------------------------------------------------------------------
# Masks (additive form precomputed in the wrapper: 0.0 keep / -1e10 masked)
# ----------------------------------------------------------------------------

_NEG = jnp.float32(-1e10)


def make_additive_masks(src, trg, src_pad_idx, trg_pad_idx):
    B, Ls = src.shape
    Lt = trg.shape[1]
    src_keep = (src != src_pad_idx)                       # [B, Ls]
    trg_keep = (trg != trg_pad_idx)                       # [B, Lt]
    causal = jnp.tril(jnp.ones((Lt, Lt), dtype=bool))
    src_add = jnp.where(src_keep[:, None, :], 0.0, _NEG).astype(jnp.float32)
    enc_mask = jnp.broadcast_to(src_add, (B, Ls, Ls))     # encoder self-attn
    cross_mask = jnp.broadcast_to(src_add, (B, Lt, Ls))   # decoder cross-attn
    trg_bool = trg_keep[:, None, :] & causal[None, :, :]
    dec_mask = jnp.where(trg_bool, 0.0, _NEG).astype(jnp.float32)
    return enc_mask, cross_mask, dec_mask


def transformer_forward(params, src, trg, src_pad_idx, trg_pad_idx, n_heads):
    enc_mask, cross_mask, dec_mask = make_additive_masks(
        src, trg, src_pad_idx, trg_pad_idx)
    enc_src = encoder(params["encoder"], src, enc_mask, n_heads)
    output, attention = decoder(params["decoder"], trg, enc_src, dec_mask,
                                cross_mask, n_heads)
    return output, attention


# ----------------------------------------------------------------------------
# Deterministic parameter initialization (synthetic; fused bf16 matmul weights)
# ----------------------------------------------------------------------------

def init_params(key, *, src_vocab, trg_vocab, d_model, n_heads, pf_dim,
                n_layers, max_len):
    keys = iter(jax.random.split(key, 1024))
    wdt = jnp.bfloat16   # matmul operand dtype; biases / LN / embeddings stay f32

    def dense(din, dout):
        w = (0.02 * jax.random.normal(next(keys), (din, dout), jnp.float32)
             ).astype(wdt)
        b = jnp.zeros((dout,), jnp.float32)
        return w, b

    def self_mha():
        wqkv, bqkv = dense(d_model, 3 * d_model)      # fused Q|K|V projection
        wo, bo = dense(d_model, d_model)
        return dict(wqkv=wqkv, bqkv=bqkv, wo=wo, bo=bo)

    def cross_mha():
        wq, bq = dense(d_model, d_model)
        wkv, bkv = dense(d_model, 2 * d_model)        # fused K|V projection
        wo, bo = dense(d_model, d_model)
        return dict(wq=wq, bq=bq, wkv=wkv, bkv=bkv, wo=wo, bo=bo)

    def ff():
        w1, b1 = dense(d_model, pf_dim)
        w2, b2 = dense(pf_dim, d_model)
        return dict(w1=w1, b1=b1, w2=w2, b2=b2)

    def ln():
        return jnp.ones((d_model,), jnp.float32), jnp.zeros((d_model,), jnp.float32)

    def enc_layer():
        g1, b1 = ln(); g2, b2 = ln()
        return dict(attn=self_mha(), ff=ff(),
                    ln1_g=g1, ln1_b=b1, ln2_g=g2, ln2_b=b2)

    def dec_layer():
        g1, b1 = ln(); g2, b2 = ln(); g3, b3 = ln()
        return dict(self_attn=self_mha(), cross_attn=cross_mha(), ff=ff(),
                    ln1_g=g1, ln1_b=b1, ln2_g=g2, ln2_b=b2, ln3_g=g3, ln3_b=b3)

    fc_out_w, fc_out_b = dense(d_model, trg_vocab)
    params = dict(
        encoder=dict(
            tok_emb=0.02 * jax.random.normal(next(keys), (src_vocab, d_model), jnp.float32),
            pos_emb=0.02 * jax.random.normal(next(keys), (max_len, d_model), jnp.float32),
            layers=[enc_layer() for _ in range(n_layers)],
        ),
        decoder=dict(
            tok_emb=0.02 * jax.random.normal(next(keys), (trg_vocab, d_model), jnp.float32),
            pos_emb=0.02 * jax.random.normal(next(keys), (max_len, d_model), jnp.float32),
            layers=[dec_layer() for _ in range(n_layers)],
            fc_out_w=fc_out_w,
            fc_out_b=fc_out_b,
        ),
    )
    return params


# ----------------------------------------------------------------------------
# Demo
# ----------------------------------------------------------------------------

if __name__ == "__main__":
    B = 2
    SRC_LEN = 8
    TRG_LEN = 8
    SRC_VOCAB = 32
    TRG_VOCAB = 32
    D_MODEL = 32
    N_HEADS = 4
    PF_DIM = 64
    N_LAYERS = 2
    MAX_LEN = 16
    SRC_PAD_IDX = 0
    TRG_PAD_IDX = 0

    root = jax.random.PRNGKey(0)
    k_param, k_src, k_trg = jax.random.split(root, 3)

    params = init_params(k_param, src_vocab=SRC_VOCAB, trg_vocab=TRG_VOCAB,
                         d_model=D_MODEL, n_heads=N_HEADS, pf_dim=PF_DIM,
                         n_layers=N_LAYERS, max_len=MAX_LEN)

    src = jax.random.randint(k_src, (B, SRC_LEN), 1, SRC_VOCAB, dtype=jnp.int32)
    trg = jax.random.randint(k_trg, (B, TRG_LEN), 1, TRG_VOCAB, dtype=jnp.int32)
    # add some padding tokens to exercise the masks
    src = src.at[1, -3:].set(SRC_PAD_IDX)
    trg = trg.at[1, -2:].set(TRG_PAD_IDX)

    fwd = jax.jit(functools.partial(transformer_forward,
                                    src_pad_idx=SRC_PAD_IDX,
                                    trg_pad_idx=TRG_PAD_IDX,
                                    n_heads=N_HEADS))
    output, attention = fwd(params, src, trg)
    jax.block_until_ready((output, attention))

    assert output.shape == (B, TRG_LEN, TRG_VOCAB)
    assert attention.shape == (B, N_HEADS, TRG_LEN, SRC_LEN)
    assert bool(jnp.all(jnp.isfinite(output)))
    # attention rows must sum to 1 (exact reciprocal keeps this tight)
    assert bool(jnp.allclose(attention.sum(-1), 1.0, atol=1e-4))
    print("KERNEL_OK")
</pallas_src>

<mosaic_0001>
module attributes {stable_mosaic.version = 11 : i64} {
  func.func @_linear_kernel(%arg0: i32, %arg1: i32, %arg2: memref<16x32xf32, #tpu.memory_space<vmem>>, %arg3: memref<32x96xbf16, #tpu.memory_space<vmem>>, %arg4: memref<1x96xf32, #tpu.memory_space<vmem>>, %arg5: memref<16x96xf32, #tpu.memory_space<vmem>>) attributes {dimension_semantics = [#tpu.dimension_semantics<parallel>, #tpu.dimension_semantics<parallel>], iteration_bounds = array<i64: 1, 1>, scalar_prefetch = 0 : i64, scratch_operands = 0 : i64, tpu.core_type = #tpu.core_type<tc>, window_params = [{transform_indices = @transform_0, window_bounds = array<i64: 16, 32>}, {transform_indices = @transform_1, window_bounds = array<i64: 32, 96>}, {transform_indices = @transform_2, window_bounds = array<i64: 1, 96>}, {transform_indices = @transform_3, window_bounds = array<i64: 16, 96>}]} {
    %c0 = arith.constant 0 : index
    %c0_0 = arith.constant 0 : index
    %0 = vector.load %arg2[%c0, %c0_0] : memref<16x32xf32, #tpu.memory_space<vmem>>, vector<16x32xf32>
    %1 = arith.truncf %0 : vector<16x32xf32> to vector<16x32xbf16>
    %c0_1 = arith.constant 0 : index
    %c0_2 = arith.constant 0 : index
    %2 = vector.load %arg3[%c0_1, %c0_2] : memref<32x96xbf16, #tpu.memory_space<vmem>>, vector<32x96xbf16>
    %cst = arith.constant dense<0.000000e+00> : vector<16x96xf32>
    %3 = tpu.matmul %1, %2, %cst {dimension_numbers = #tpu.dot_dimension_numbers<[1], [0], [0], [1], [0, 0, 1, 1], [], []>} : vector<16x32xbf16>, vector<32x96xbf16>, vector<16x96xf32> -> vector<16x96xf32>
    %c0_3 = arith.constant 0 : index
    %c0_4 = arith.constant 0 : index
    %4 = vector.load %arg4[%c0_3, %c0_4] : memref<1x96xf32, #tpu.memory_space<vmem>>, vector<1x96xf32>
    %5 = vector.broadcast %4 : vector<1x96xf32> to vector<16x96xf32>
    %6 = arith.addf %3, %5 : vector<16x96xf32>
    %c0_5 = arith.constant 0 : index
    %c0_6 = arith.constant 0 : index
    %7 = vector.load %arg5[%c0_5, %c0_6] : memref<16x96xf32, #tpu.memory_space<vmem>>, vector<16x96xf32>
    tpu.vector_store %arg5[%c0_5, %c0_6], %6 {strides = array<i32>} : memref<16x96xf32, #tpu.memory_space<vmem>>, vector<16x96xf32>,
    return
  }
  func.func @transform_0(%arg0: i32, %arg1: i32) -> (i32, i32) {
    %c0_i32 = arith.constant 0 : i32
    %c0_i32_0 = arith.constant 0 : i32
    return %arg0, %c0_i32 : i32, i32
  }
  func.func @transform_1(%arg0: i32, %arg1: i32) -> (i32, i32) {
    %c0_i32 = arith.constant 0 : i32
    %c0_i32_0 = arith.constant 0 : i32
    return %c0_i32, %arg1 : i32, i32
  }
  func.func @transform_2(%arg0: i32, %arg1: i32) -> (i32, i32) {
    %c0_i32 = arith.constant 0 : i32
    %c0_i32_0 = arith.constant 0 : i32
    return %c0_i32, %arg1 : i32, i32
  }
  func.func @transform_3(%arg0: i32, %arg1: i32) -> (i32, i32) {
    %c0_i32 = arith.constant 0 : i32
    return %arg0, %arg1 : i32, i32
  }
}

module attributes {stable_mosaic.version = 11 : i64} {
  func.func @_mha_kernel(%arg0: i32, %arg1: memref<1x4x8x8xf32, #tpu.memory_space<vmem>>, %arg2: memref<1x4x8x8xf32, #tpu.memory_space<vmem>>, %arg3: memref<1x4x8x8xf32, #tpu.memory_space<vmem>>, %arg4: memref<1x8x8xf32, #tpu.memory_space<vmem>>, %arg5: memref<1x4x8x8xf32, #tpu.memory_space<vmem>>) attributes {dimension_semantics = [#tpu.dimension_semantics<parallel>], iteration_bounds = array<i64: 2>, scalar_prefetch = 0 : i64, scratch_operands = 0 : i64, tpu.core_type = #tpu.core_type<tc>, window_params = [{transform_indices = @transform_0, window_bounds = array<i64: 1, 4, 8, 8>}, {transform_indices = @transform_1, window_bounds = array<i64: 1, 4, 8, 8>}, {transform_indices = @transform_2, window_bounds = array<i64: 1, 4, 8, 8>}, {transform_indices = @transform_3, window_bounds = array<i64: 1, 8, 8>}, {transform_indices = @transform_4, window_bounds = array<i64: 1, 4, 8, 8>}]} {
    %c0 = arith.constant 0 : index
    %c0_0 = arith.constant 0 : index
    %c0_1 = arith.constant 0 : index
    %c0_2 = arith.constant 0 : index
    %0 = vector.load %arg1[%c0, %c0_0, %c0_1, %c0_2] : memref<1x4x8x8xf32, #tpu.memory_space<vmem>>, vector<1x4x8x8xf32>
    %1 = vector.shape_cast %0 : vector<1x4x8x8xf32> to vector<4x8x8xf32>
    %2 = arith.truncf %1 : vector<4x8x8xf32> to vector<4x8x8xbf16>
    %c0_3 = arith.constant 0 : index
    %c0_4 = arith.constant 0 : index
    %c0_5 = arith.constant 0 : index
    %c0_6 = arith.constant 0 : index
    %3 = vector.load %arg2[%c0_3, %c0_4, %c0_5, %c0_6] : memref<1x4x8x8xf32, #tpu.memory_space<vmem>>, vector<1x4x8x8xf32>
    %4 = vector.shape_cast %3 : vector<1x4x8x8xf32> to vector<4x8x8xf32>
    %5 = arith.truncf %4 : vector<4x8x8xf32> to vector<4x8x8xbf16>
    %c0_7 = arith.constant 0 : index
    %c0_8 = arith.constant 0 : index
    %c0_9 = arith.constant 0 : index
    %c0_10 = arith.constant 0 : index
    %6 = vector.load %arg3[%c0_7, %c0_8, %c0_9, %c0_10] : memref<1x4x8x8xf32, #tpu.memory_space<vmem>>, vector<1x4x8x8xf32>
    %7 = vector.shape_cast %6 : vector<1x4x8x8xf32> to vector<4x8x8xf32>
    %8 = arith.truncf %7 : vector<4x8x8xf32> to vector<4x8x8xbf16>
    %cst = arith.constant dense<0.000000e+00> : vector<4x8x8xf32>
    %9 = tpu.matmul %2, %5, %cst {dimension_numbers = #tpu.dot_dimension_numbers<[2], [2], [1], [1], [0, 0, 0, 1, 1, 1], [0], [0]>} : vector<4x8x8xbf16>, vector<4x8x8xbf16>, vector<4x8x8xf32> -> vector<4x8x8xf32>
    %cst_11 = arith.constant 0.353553385 : f32
    %10 = vector.broadcast %cst_11 : f32 to vector<4x8x8xf32>
    %11 = arith.mulf %9, %10 : vector<4x8x8xf32>
    %c0_12 = arith.constant 0 : index
    %c0_13 = arith.constant 0 : index
    %c0_14 = arith.constant 0 : index
    %12 = vector.load %arg4[%c0_12, %c0_13, %c0_14] : memref<1x8x8xf32, #tpu.memory_space<vmem>>, vector<1x8x8xf32>
    %13 = vector.shape_cast %12 : vector<1x8x8xf32> to vector<8x8xf32>
    %14 = vector.shape_cast %13 : vector<8x8xf32> to vector<1x8x8xf32>
    %15 = vector.broadcast %14 : vector<1x8x8xf32> to vector<4x8x8xf32>
    %16 = arith.addf %11, %15 : vector<4x8x8xf32>
    %cst_15 = arith.constant dense<0xFF800000> : vector<4x8xf32>
    %17 = vector.multi_reduction <maximumf>, %16, %cst_15 [2] : vector<4x8x8xf32> to vector<4x8xf32>
    %18 = vector.shape_cast %17 : vector<4x8xf32> to vector<4x8x1xf32>
    %19 = vector.broadcast %18 : vector<4x8x1xf32> to vector<4x8x8xf32>
    %20 = arith.subf %16, %19 : vector<4x8x8xf32>
    %21 = math.exp %20 : vector<4x8x8xf32>
    %cst_16 = arith.constant dense<0.000000e+00> : vector<4x8xf32>
    %22 = vector.multi_reduction <add>, %21, %cst_16 [2] : vector<4x8x8xf32> to vector<4x8xf32>
    %23 = vector.shape_cast %22 : vector<4x8xf32> to vector<4x8x1xf32>
    %24 = tpu.reciprocal %23 : vector<4x8x1xf32> -> vector<4x8x1xf32>
    %25 = vector.broadcast %24 : vector<4x8x1xf32> to vector<4x8x8xf32>
    %26 = arith.mulf %21, %25 : vector<4x8x8xf32>
    %27 = arith.truncf %26 : vector<4x8x8xf32> to vector<4x8x8xbf16>
    %cst_17 = arith.constant dense<0.000000e+00> : vector<4x8x8xf32>
    %28 = tpu.matmul %27, %8, %cst_17 {dimension_numbers = #tpu.dot_dimension_numbers<[2], [1], [1], [2], [0, 0, 0, 1, 1, 2], [0], [0]>} : vector<4x8x8xbf16>, vector<4x8x8xbf16>, vector<4x8x8xf32> -> vector<4x8x8xf32>
    %c0_18 = arith.constant 0 : index
    %c0_19 = arith.constant 0 : index
    %c0_20 = arith.constant 0 : index
    %c0_21 = arith.constant 0 : index
    %29 = vector.load %arg5[%c0_18, %c0_19, %c0_20, %c0_21] : memref<1x4x8x8xf32, #tpu.memory_space<vmem>>, vector<1x4x8x8xf32>
    %30 = vector.shape_cast %29 : vector<1x4x8x8xf32> to vector<4x8x8xf32>
    %31 = vector.shape_cast %28 : vector<4x8x8xf32> to vector<1x4x8x8xf32>
    tpu.vector_store %arg5[%c0_18, %c0_19, %c0_20, %c0_21], %31 {strides = array<i32>} : memref<1x4x8x8xf32, #tpu.memory_space<vmem>>, vector<1x4x8x8xf32>,
    return
  }
  func.func @transform_0(%arg0: i32) -> (i32, i32, i32, i32) {
    %c0_i32 = arith.constant 0 : i32
    %c0_i32_0 = arith.constant 0 : i32
    %c0_i32_1 = arith.constant 0 : i32
    %c0_i32_2 = arith.constant 0 : i32
    return %arg0, %c0_i32, %c0_i32_0, %c0_i32_1 : i32, i32, i32, i32
  }
  func.func @transform_1(%arg0: i32) -> (i32, i32, i32, i32) {
    %c0_i32 = arith.constant 0 : i32
    %c0_i32_0 = arith.constant 0 : i32
    %c0_i32_1 = arith.constant 0 : i32
    %c0_i32_2 = arith.constant 0 : i32
    return %arg0, %c0_i32, %c0_i32_0, %c0_i32_1 : i32, i32, i32, i32
  }
  func.func @transform_2(%arg0: i32) -> (i32, i32, i32, i32) {
    %c0_i32 = arith.constant 0 : i32
    %c0_i32_0 = arith.constant 0 : i32
    %c0_i32_1 = arith.constant 0 : i32
    %c0_i32_2 = arith.constant 0 : i32
    return %arg0, %c0_i32, %c0_i32_0, %c0_i32_1 : i32, i32, i32, i32
  }
  func.func @transform_3(%arg0: i32) -> (i32, i32, i32) {
    %c0_i32 = arith.constant 0 : i32
    %c0_i32_0 = arith.constant 0 : i32
    %c0_i32_1 = arith.constant 0 : i32
    return %arg0, %c0_i32, %c0_i32_0 : i32, i32, i32
  }
  func.func @transform_4(%arg0: i32) -> (i32, i32, i32, i32) {
    %c0_i32 = arith.constant 0 : i32
    %c0_i32_0 = arith.constant 0 : i32
    %c0_i32_1 = arith.constant 0 : i32
    %c0_i32_2 = arith.constant 0 : i32
    return %arg0, %c0_i32, %c0_i32_0, %c0_i32_1 : i32, i32, i32, i32
  }
}

module attributes {stable_mosaic.version = 11 : i64} {
  func.func @_proj_add_ln_kernel(%arg0: i32, %arg1: memref<16x32xf32, #tpu.memory_space<vmem>>, %arg2: memref<32x32xbf16, #tpu.memory_space<vmem>>, %arg3: memref<1x32xf32, #tpu.memory_space<vmem>>, %arg4: memref<16x32xf32, #tpu.memory_space<vmem>>, %arg5: memref<1x32xf32, #tpu.memory_space<vmem>>, %arg6: memref<1x32xf32, #tpu.memory_space<vmem>>, %arg7: memref<16x32xf32, #tpu.memory_space<vmem>>) attributes {dimension_semantics = [#tpu.dimension_semantics<parallel>], iteration_bounds = array<i64: 1>, scalar_prefetch = 0 : i64, scratch_operands = 0 : i64, tpu.core_type = #tpu.core_type<tc>, window_params = [{transform_indices = @transform_0, window_bounds = array<i64: 16, 32>}, {pipeline_mode = #tpu.pipeline_mode<synchronous>, transform_indices = @transform_1, window_bounds = array<i64: 32, 32>}, {pipeline_mode = #tpu.pipeline_mode<synchronous>, transform_indices = @transform_2, window_bounds = array<i64: 1, 32>}, {transform_indices = @transform_3, window_bounds = array<i64: 16, 32>}, {pipeline_mode = #tpu.pipeline_mode<synchronous>, transform_indices = @transform_4, window_bounds = array<i64: 1, 32>}, {pipeline_mode = #tpu.pipeline_mode<synchronous>, transform_indices = @transform_5, window_bounds = array<i64: 1, 32>}, {transform_indices = @transform_6, window_bounds = array<i64: 16, 32>}]} {
    %c0 = arith.constant 0 : index
    %c0_0 = arith.constant 0 : index
    %0 = vector.load %arg1[%c0, %c0_0] : memref<16x32xf32, #tpu.memory_space<vmem>>, vector<16x32xf32>
    %1 = arith.truncf %0 : vector<16x32xf32> to vector<16x32xbf16>
    %c0_1 = arith.constant 0 : index
    %c0_2 = arith.constant 0 : index
    %2 = vector.load %arg2[%c0_1, %c0_2] : memref<32x32xbf16, #tpu.memory_space<vmem>>, vector<32x32xbf16>
    %cst = arith.constant dense<0.000000e+00> : vector<16x32xf32>
    %3 = tpu.matmul %1, %2, %cst {dimension_numbers = #tpu.dot_dimension_numbers<[1], [0], [0], [1], [0, 0, 1, 1], [], []>} : vector<16x32xbf16>, vector<32x32xbf16>, vector<16x32xf32> -> vector<16x32xf32>
    %c0_3 = arith.constant 0 : index
    %c0_4 = arith.constant 0 : index
    %4 = vector.load %arg3[%c0_3, %c0_4] : memref<1x32xf32, #tpu.memory_space<vmem>>, vector<1x32xf32>
    %5 = vector.broadcast %4 : vector<1x32xf32> to vector<16x32xf32>
    %6 = arith.addf %3, %5 : vector<16x32xf32>
    %c0_5 = arith.constant 0 : index
    %c0_6 = arith.constant 0 : index
    %7 = vector.load %arg4[%c0_5, %c0_6] : memref<16x32xf32, #tpu.memory_space<vmem>>, vector<16x32xf32>
    %8 = arith.addf %6, %7 : vector<16x32xf32>
    %cst_7 = arith.constant dense<0.000000e+00> : vector<16xf32>
    %9 = vector.multi_reduction <add>, %8, %cst_7 [1] : vector<16x32xf32> to vector<16xf32>
    %10 = vector.shape_cast %9 : vector<16xf32> to vector<16x1xf32>
    %cst_8 = arith.constant 3.200000e+01 : f32
    %11 = vector.broadcast %cst_8 : f32 to vector<16x1xf32>
    %12 = arith.divf %10, %11 : vector<16x1xf32>
    %13 = vector.broadcast %12 : vector<16x1xf32> to vector<16x32xf32>
    %14 = arith.subf %8, %13 : vector<16x32xf32>
    %15 = arith.mulf %14, %14 : vector<16x32xf32>
    %cst_9 = arith.constant dense<0.000000e+00> : vector<16xf32>
    %16 = vector.multi_reduction <add>, %15, %cst_9 [1] : vector<16x32xf32> to vector<16xf32>
    %17 = vector.shape_cast %16 : vector<16xf32> to vector<16x1xf32>
    %cst_10 = arith.constant 3.200000e+01 : f32
    %18 = vector.broadcast %cst_10 : f32 to vector<16x1xf32>
    %19 = arith.divf %17, %18 : vector<16x1xf32>
    %20 = vector.broadcast %12 : vector<16x1xf32> to vector<16x32xf32>
    %21 = arith.subf %8, %20 : vector<16x32xf32>
    %cst_11 = arith.constant 9.99999974E-6 : f32
    %22 = vector.broadcast %cst_11 : f32 to vector<16x1xf32>
    %23 = arith.addf %19, %22 : vector<16x1xf32>
    %24 = math.rsqrt %23 : vector<16x1xf32>
    %25 = vector.broadcast %24 : vector<16x1xf32> to vector<16x32xf32>
    %26 = arith.mulf %21, %25 : vector<16x32xf32>
    %c0_12 = arith.constant 0 : index
    %c0_13 = arith.constant 0 : index
    %27 = vector.load %arg5[%c0_12, %c0_13] : memref<1x32xf32, #tpu.memory_space<vmem>>, vector<1x32xf32>
    %28 = vector.broadcast %27 : vector<1x32xf32> to vector<16x32xf32>
    %29 = arith.mulf %26, %28 : vector<16x32xf32>
    %c0_14 = arith.constant 0 : index
    %c0_15 = arith.constant 0 : index
    %30 = vector.load %arg6[%c0_14, %c0_15] : memref<1x32xf32, #tpu.memory_space<vmem>>, vector<1x32xf32>
    %31 = vector.broadcast %30 : vector<1x32xf32> to vector<16x32xf32>
    %32 = arith.addf %29, %31 : vector<16x32xf32>
    %c0_16 = arith.constant 0 : index
    %c0_17 = arith.constant 0 : index
    %33 = vector.load %arg7[%c0_16, %c0_17] : memref<16x32xf32, #tpu.memory_space<vmem>>, vector<16x32xf32>
    tpu.vector_store %arg7[%c0_16, %c0_17], %32 {strides = array<i32>} : memref<16x32xf32, #tpu.memory_space<vmem>>, vector<16x32xf32>,
    return
  }
  func.func @transform_0(%arg0: i32) -> (i32, i32) {
    %c0_i32 = arith.constant 0 : i32
    %c0_i32_0 = arith.constant 0 : i32
    return %arg0, %c0_i32 : i32, i32
  }
  func.func @transform_1(%arg0: i32) -> (i32, i32) {
    %c0_i32 = arith.constant 0 : i32
    %c0_i32_0 = arith.constant 0 : i32
    %c0_i32_1 = arith.constant 0 : i32
    return %c0_i32, %c0_i32_0 : i32, i32
  }
  func.func @transform_2(%arg0: i32) -> (i32, i32) {
    %c0_i32 = arith.constant 0 : i32
    %c0_i32_0 = arith.constant 0 : i32
    %c0_i32_1 = arith.constant 0 : i32
    return %c0_i32, %c0_i32_0 : i32, i32
  }
  func.func @transform_3(%arg0: i32) -> (i32, i32) {
    %c0_i32 = arith.constant 0 : i32
    %c0_i32_0 = arith.constant 0 : i32
    return %arg0, %c0_i32 : i32, i32
  }
  func.func @transform_4(%arg0: i32) -> (i32, i32) {
    %c0_i32 = arith.constant 0 : i32
    %c0_i32_0 = arith.constant 0 : i32
    %c0_i32_1 = arith.constant 0 : i32
    return %c0_i32, %c0_i32_0 : i32, i32
  }
  func.func @transform_5(%arg0: i32) -> (i32, i32) {
    %c0_i32 = arith.constant 0 : i32
    %c0_i32_0 = arith.constant 0 : i32
    %c0_i32_1 = arith.constant 0 : i32
    return %c0_i32, %c0_i32_0 : i32, i32
  }
  func.func @transform_6(%arg0: i32) -> (i32, i32) {
    %c0_i32 = arith.constant 0 : i32
    %c0_i32_0 = arith.constant 0 : i32
    return %arg0, %c0_i32 : i32, i32
  }
}

module attributes {stable_mosaic.version = 11 : i64} {
  func.func @_linear_kernel(%arg0: i32, %arg1: i32, %arg2: memref<16x32xf32, #tpu.memory_space<vmem>>, %arg3: memref<32x32xbf16, #tpu.memory_space<vmem>>, %arg4: memref<1x32xf32, #tpu.memory_space<vmem>>, %arg5: memref<16x32xf32, #tpu.memory_space<vmem>>) attributes {dimension_semantics = [#tpu.dimension_semantics<parallel>, #tpu.dimension_semantics<parallel>], iteration_bounds = array<i64: 1, 1>, scalar_prefetch = 0 : i64, scratch_operands = 0 : i64, tpu.core_type = #tpu.core_type<tc>, window_params = [{transform_indices = @transform_0, window_bounds = array<i64: 16, 32>}, {transform_indices = @transform_1, window_bounds = array<i64: 32, 32>}, {transform_indices = @transform_2, window_bounds = array<i64: 1, 32>}, {transform_indices = @transform_3, window_bounds = array<i64: 16, 32>}]} {
    %c0 = arith.constant 0 : index
    %c0_0 = arith.constant 0 : index
    %0 = vector.load %arg2[%c0, %c0_0] : memref<16x32xf32, #tpu.memory_space<vmem>>, vector<16x32xf32>
    %1 = arith.truncf %0 : vector<16x32xf32> to vector<16x32xbf16>
    %c0_1 = arith.constant 0 : index
    %c0_2 = arith.constant 0 : index
    %2 = vector.load %arg3[%c0_1, %c0_2] : memref<32x32xbf16, #tpu.memory_space<vmem>>, vector<32x32xbf16>
    %cst = arith.constant dense<0.000000e+00> : vector<16x32xf32>
    %3 = tpu.matmul %1, %2, %cst {dimension_numbers = #tpu.dot_dimension_numbers<[1], [0], [0], [1], [0, 0, 1, 1], [], []>} : vector<16x32xbf16>, vector<32x32xbf16>, vector<16x32xf32> -> vector<16x32xf32>
    %c0_3 = arith.constant 0 : index
    %c0_4 = arith.constant 0 : index
    %4 = vector.load %arg4[%c0_3, %c0_4] : memref<1x32xf32, #tpu.memory_space<vmem>>, vector<1x32xf32>
    %5 = vector.broadcast %4 : vector<1x32xf32> to vector<16x32xf32>
    %6 = arith.addf %3, %5 : vector<16x32xf32>
    %c0_5 = arith.constant 0 : index
    %c0_6 = arith.constant 0 : index
    %7 = vector.load %arg5[%c0_5, %c0_6] : memref<16x32xf32, #tpu.memory_space<vmem>>, vector<16x32xf32>
    tpu.vector_store %arg5[%c0_5, %c0_6], %6 {strides = array<i32>} : memref<16x32xf32, #tpu.memory_space<vmem>>, vector<16x32xf32>,
    return
  }
  func.func @transform_0(%arg0: i32, %arg1: i32) -> (i32, i32) {
    %c0_i32 = arith.constant 0 : i32
    %c0_i32_0 = arith.constant 0 : i32
    return %arg0, %c0_i32 : i32, i32
  }
  func.func @transform_1(%arg0: i32, %arg1: i32) -> (i32, i32) {
    %c0_i32 = arith.constant 0 : i32
    %c0_i32_0 = arith.constant 0 : i32
    return %c0_i32, %arg1 : i32, i32
  }
  func.func @transform_2(%arg0: i32, %arg1: i32) -> (i32, i32) {
    %c0_i32 = arith.constant 0 : i32
    %c0_i32_0 = arith.constant 0 : i32
    return %c0_i32, %arg1 : i32, i32
  }
  func.func @transform_3(%arg0: i32, %arg1: i32) -> (i32, i32) {
    %c0_i32 = arith.constant 0 : i32
    return %arg0, %arg1 : i32, i32
  }
}

module attributes {stable_mosaic.version = 11 : i64} {
  func.func @_linear_kernel(%arg0: i32, %arg1: i32, %arg2: memref<16x32xf32, #tpu.memory_space<vmem>>, %arg3: memref<32x64xbf16, #tpu.memory_space<vmem>>, %arg4: memref<1x64xf32, #tpu.memory_space<vmem>>, %arg5: memref<16x64xf32, #tpu.memory_space<vmem>>) attributes {dimension_semantics = [#tpu.dimension_semantics<parallel>, #tpu.dimension_semantics<parallel>], iteration_bounds = array<i64: 1, 1>, scalar_prefetch = 0 : i64, scratch_operands = 0 : i64, tpu.core_type = #tpu.core_type<tc>, window_params = [{transform_indices = @transform_0, window_bounds = array<i64: 16, 32>}, {transform_indices = @transform_1, window_bounds = array<i64: 32, 64>}, {transform_indices = @transform_2, window_bounds = array<i64: 1, 64>}, {transform_indices = @transform_3, window_bounds = array<i64: 16, 64>}]} {
    %c0 = arith.constant 0 : index
    %c0_0 = arith.constant 0 : index
    %0 = vector.load %arg2[%c0, %c0_0] : memref<16x32xf32, #tpu.memory_space<vmem>>, vector<16x32xf32>
    %1 = arith.truncf %0 : vector<16x32xf32> to vector<16x32xbf16>
    %c0_1 = arith.constant 0 : index
    %c0_2 = arith.constant 0 : index
    %2 = vector.load %arg3[%c0_1, %c0_2] : memref<32x64xbf16, #tpu.memory_space<vmem>>, vector<32x64xbf16>
    %cst = arith.constant dense<0.000000e+00> : vector<16x64xf32>
    %3 = tpu.matmul %1, %2, %cst {dimension_numbers = #tpu.dot_dimension_numbers<[1], [0], [0], [1], [0, 0, 1, 1], [], []>} : vector<16x32xbf16>, vector<32x64xbf16>, vector<16x64xf32> -> vector<16x64xf32>
    %c0_3 = arith.constant 0 : index
    %c0_4 = arith.constant 0 : index
    %4 = vector.load %arg4[%c0_3, %c0_4] : memref<1x64xf32, #tpu.memory_space<vmem>>, vector<1x64xf32>
    %5 = vector.broadcast %4 : vector<1x64xf32> to vector<16x64xf32>
    %6 = arith.addf %3, %5 : vector<16x64xf32>
    %c0_5 = arith.constant 0 : index
    %c0_6 = arith.constant 0 : index
    %7 = vector.load %arg5[%c0_5, %c0_6] : memref<16x64xf32, #tpu.memory_space<vmem>>, vector<16x64xf32>
    tpu.vector_store %arg5[%c0_5, %c0_6], %6 {strides = array<i32>} : memref<16x64xf32, #tpu.memory_space<vmem>>, vector<16x64xf32>,
    return
  }
  func.func @transform_0(%arg0: i32, %arg1: i32) -> (i32, i32) {
    %c0_i32 = arith.constant 0 : i32
    %c0_i32_0 = arith.constant 0 : i32
    return %arg0, %c0_i32 : i32, i32
  }
  func.func @transform_1(%arg0: i32, %arg1: i32) -> (i32, i32) {
    %c0_i32 = arith.constant 0 : i32
    %c0_i32_0 = arith.constant 0 : i32
    return %c0_i32, %arg1 : i32, i32
  }
  func.func @transform_2(%arg0: i32, %arg1: i32) -> (i32, i32) {
    %c0_i32 = arith.constant 0 : i32
    %c0_i32_0 = arith.constant 0 : i32
    return %c0_i32, %arg1 : i32, i32
  }
  func.func @transform_3(%arg0: i32, %arg1: i32) -> (i32, i32) {
    %c0_i32 = arith.constant 0 : i32
    return %arg0, %arg1 : i32, i32
  }
}

module attributes {stable_mosaic.version = 11 : i64} {
  func.func @_ffn_add_ln_kernel(%arg0: i32, %arg1: memref<16x32xf32, #tpu.memory_space<vmem>>, %arg2: memref<32x64xbf16, #tpu.memory_space<vmem>>, %arg3: memref<1x64xf32, #tpu.memory_space<vmem>>, %arg4: memref<64x32xbf16, #tpu.memory_space<vmem>>, %arg5: memref<1x32xf32, #tpu.memory_space<vmem>>, %arg6: memref<1x32xf32, #tpu.memory_space<vmem>>, %arg7: memref<1x32xf32, #tpu.memory_space<vmem>>, %arg8: memref<16x32xf32, #tpu.memory_space<vmem>>) attributes {dimension_semantics = [#tpu.dimension_semantics<parallel>], iteration_bounds = array<i64: 1>, scalar_prefetch = 0 : i64, scratch_operands = 0 : i64, tpu.core_type = #tpu.core_type<tc>, window_params = [{transform_indices = @transform_0, window_bounds = array<i64: 16, 32>}, {pipeline_mode = #tpu.pipeline_mode<synchronous>, transform_indices = @transform_1, window_bounds = array<i64: 32, 64>}, {pipeline_mode = #tpu.pipeline_mode<synchronous>, transform_indices = @transform_2, window_bounds = array<i64: 1, 64>}, {pipeline_mode = #tpu.pipeline_mode<synchronous>, transform_indices = @transform_3, window_bounds = array<i64: 64, 32>}, {pipeline_mode = #tpu.pipeline_mode<synchronous>, transform_indices = @transform_4, window_bounds = array<i64: 1, 32>}, {pipeline_mode = #tpu.pipeline_mode<synchronous>, transform_indices = @transform_5, window_bounds = array<i64: 1, 32>}, {pipeline_mode = #tpu.pipeline_mode<synchronous>, transform_indices = @transform_6, window_bounds = array<i64: 1, 32>}, {transform_indices = @transform_7, window_bounds = array<i64: 16, 32>}]} {
    %c0 = arith.constant 0 : index
    %c0_0 = arith.constant 0 : index
    %0 = vector.load %arg1[%c0, %c0_0] : memref<16x32xf32, #tpu.memory_space<vmem>>, vector<16x32xf32>
    %1 = arith.truncf %0 : vector<16x32xf32> to vector<16x32xbf16>
    %c0_1 = arith.constant 0 : index
    %c0_2 = arith.constant 0 : index
    %2 = vector.load %arg2[%c0_1, %c0_2] : memref<32x64xbf16, #tpu.memory_space<vmem>>, vector<32x64xbf16>
    %cst = arith.constant dense<0.000000e+00> : vector<16x64xf32>
    %3 = tpu.matmul %1, %2, %cst {dimension_numbers = #tpu.dot_dimension_numbers<[1], [0], [0], [1], [0, 0, 1, 1], [], []>} : vector<16x32xbf16>, vector<32x64xbf16>, vector<16x64xf32> -> vector<16x64xf32>
    %c0_3 = arith.constant 0 : index
    %c0_4 = arith.constant 0 : index
    %4 = vector.load %arg3[%c0_3, %c0_4] : memref<1x64xf32, #tpu.memory_space<vmem>>, vector<1x64xf32>
    %5 = vector.broadcast %4 : vector<1x64xf32> to vector<16x64xf32>
    %6 = arith.addf %3, %5 : vector<16x64xf32>
    %cst_5 = arith.constant 0.000000e+00 : f32
    %7 = vector.broadcast %cst_5 : f32 to vector<16x64xf32>
    %8 = arith.maximumf %6, %7 : vector<16x64xf32>
    %9 = arith.truncf %8 : vector<16x64xf32> to vector<16x64xbf16>
    %c0_6 = arith.constant 0 : index
    %c0_7 = arith.constant 0 : index
    %10 = vector.load %arg4[%c0_6, %c0_7] : memref<64x32xbf16, #tpu.memory_space<vmem>>, vector<64x32xbf16>
    %cst_8 = arith.constant dense<0.000000e+00> : vector<16x32xf32>
    %11 = tpu.matmul %9, %10, %cst_8 {dimension_numbers = #tpu.dot_dimension_numbers<[1], [0], [0], [1], [0, 0, 1, 1], [], []>} : vector<16x64xbf16>, vector<64x32xbf16>, vector<16x32xf32> -> vector<16x32xf32>
    %c0_9 = arith.constant 0 : index
    %c0_10 = arith.constant 0 : index
    %12 = vector.load %arg5[%c0_9, %c0_10] : memref<1x32xf32, #tpu.memory_space<vmem>>, vector<1x32xf32>
    %13 = vector.broadcast %12 : vector<1x32xf32> to vector<16x32xf32>
    %14 = arith.addf %11, %13 : vector<16x32xf32>
    %15 = arith.addf %14, %0 : vector<16x32xf32>
    %cst_11 = arith.constant dense<0.000000e+00> : vector<16xf32>
    %16 = vector.multi_reduction <add>, %15, %cst_11 [1] : vector<16x32xf32> to vector<16xf32>
    %17 = vector.shape_cast %16 : vector<16xf32> to vector<16x1xf32>
    %cst_12 = arith.constant 3.200000e+01 : f32
    %18 = vector.broadcast %cst_12 : f32 to vector<16x1xf32>
    %19 = arith.divf %17, %18 : vector<16x1xf32>
    %20 = vector.broadcast %19 : vector<16x1xf32> to vector<16x32xf32>
    %21 = arith.subf %15, %20 : vector<16x32xf32>
    %22 = arith.mulf %21, %21 : vector<16x32xf32>
    %cst_13 = arith.constant dense<0.000000e+00> : vector<16xf32>
    %23 = vector.multi_reduction <add>, %22, %cst_13 [1] : vector<16x32xf32> to vector<16xf32>
    %24 = vector.shape_cast %23 : vector<16xf32> to vector<16x1xf32>
    %cst_14 = arith.constant 3.200000e+01 : f32
    %25 = vector.broadcast %cst_14 : f32 to vector<16x1xf32>
    %26 = arith.divf %24, %25 : vector<16x1xf32>
    %27 = vector.broadcast %19 : vector<16x1xf32> to vector<16x32xf32>
    %28 = arith.subf %15, %27 : vector<16x32xf32>
    %cst_15 = arith.constant 9.99999974E-6 : f32
    %29 = vector.broadcast %cst_15 : f32 to vector<16x1xf32>
    %30 = arith.addf %26, %29 : vector<16x1xf32>
    %31 = math.rsqrt %30 : vector<16x1xf32>
    %32 = vector.broadcast %31 : vector<16x1xf32> to vector<16x32xf32>
    %33 = arith.mulf %28, %32 : vector<16x32xf32>
    %c0_16 = arith.constant 0 : index
    %c0_17 = arith.constant 0 : index
    %34 = vector.load %arg6[%c0_16, %c0_17] : memref<1x32xf32, #tpu.memory_space<vmem>>, vector<1x32xf32>
    %35 = vector.broadcast %34 : vector<1x32xf32> to vector<16x32xf32>
    %36 = arith.mulf %33, %35 : vector<16x32xf32>
    %c0_18 = arith.constant 0 : index
    %c0_19 = arith.constant 0 : index
    %37 = vector.load %arg7[%c0_18, %c0_19] : memref<1x32xf32, #tpu.memory_space<vmem>>, vector<1x32xf32>
    %38 = vector.broadcast %37 : vector<1x32xf32> to vector<16x32xf32>
    %39 = arith.addf %36, %38 : vector<16x32xf32>
    %c0_20 = arith.constant 0 : index
    %c0_21 = arith.constant 0 : index
    %40 = vector.load %arg8[%c0_20, %c0_21] : memref<16x32xf32, #tpu.memory_space<vmem>>, vector<16x32xf32>
    tpu.vector_store %arg8[%c0_20, %c0_21], %39 {strides = array<i32>} : memref<16x32xf32, #tpu.memory_space<vmem>>, vector<16x32xf32>,
    return
  }
  func.func @transform_0(%arg0: i32) -> (i32, i32) {
    %c0_i32 = arith.constant 0 : i32
    %c0_i32_0 = arith.constant 0 : i32
    return %arg0, %c0_i32 : i32, i32
  }
  func.func @transform_1(%arg0: i32) -> (i32, i32) {
    %c0_i32 = arith.constant 0 : i32
    %c0_i32_0 = arith.constant 0 : i32
    %c0_i32_1 = arith.constant 0 : i32
    return %c0_i32, %c0_i32_0 : i32, i32
  }
  func.func @transform_2(%arg0: i32) -> (i32, i32) {
    %c0_i32 = arith.constant 0 : i32
    %c0_i32_0 = arith.constant 0 : i32
    %c0_i32_1 = arith.constant 0 : i32
    return %c0_i32, %c0_i32_0 : i32, i32
  }
  func.func @transform_3(%arg0: i32) -> (i32, i32) {
    %c0_i32 = arith.constant 0 : i32
    %c0_i32_0 = arith.constant 0 : i32
    %c0_i32_1 = arith.constant 0 : i32
    return %c0_i32, %c0_i32_0 : i32, i32
  }
  func.func @transform_4(%arg0: i32) -> (i32, i32) {
    %c0_i32 = arith.constant 0 : i32
    %c0_i32_0 = arith.constant 0 : i32
    %c0_i32_1 = arith.constant 0 : i32
    return %c0_i32, %c0_i32_0 : i32, i32
  }
  func.func @transform_5(%arg0: i32) -> (i32, i32) {
    %c0_i32 = arith.constant 0 : i32
    %c0_i32_0 = arith.constant 0 : i32
    %c0_i32_1 = arith.constant 0 : i32
    return %c0_i32, %c0_i32_0 : i32, i32
  }
  func.func @transform_6(%arg0: i32) -> (i32, i32) {
    %c0_i32 = arith.constant 0 : i32
    %c0_i32_0 = arith.constant 0 : i32
    %c0_i32_1 = arith.constant 0 : i32
    return %c0_i32, %c0_i32_0 : i32, i32
  }
  func.func @transform_7(%arg0: i32) -> (i32, i32) {
    %c0_i32 = arith.constant 0 : i32
    %c0_i32_0 = arith.constant 0 : i32
    return %arg0, %c0_i32 : i32, i32
  }
}

module attributes {stable_mosaic.version = 11 : i64} {
  func.func @_mha_attn_kernel(%arg0: i32, %arg1: memref<1x4x8x8xf32, #tpu.memory_space<vmem>>, %arg2: memref<1x4x8x8xf32, #tpu.memory_space<vmem>>, %arg3: memref<1x4x8x8xf32, #tpu.memory_space<vmem>>, %arg4: memref<1x8x8xf32, #tpu.memory_space<vmem>>, %arg5: memref<1x4x8x8xf32, #tpu.memory_space<vmem>>, %arg6: memref<1x4x8x8xf32, #tpu.memory_space<vmem>>) attributes {dimension_semantics = [#tpu.dimension_semantics<parallel>], iteration_bounds = array<i64: 2>, scalar_prefetch = 0 : i64, scratch_operands = 0 : i64, tpu.core_type = #tpu.core_type<tc>, window_params = [{transform_indices = @transform_0, window_bounds = array<i64: 1, 4, 8, 8>}, {transform_indices = @transform_1, window_bounds = array<i64: 1, 4, 8, 8>}, {transform_indices = @transform_2, window_bounds = array<i64: 1, 4, 8, 8>}, {transform_indices = @transform_3, window_bounds = array<i64: 1, 8, 8>}, {transform_indices = @transform_4, window_bounds = array<i64: 1, 4, 8, 8>}, {transform_indices = @transform_5, window_bounds = array<i64: 1, 4, 8, 8>}]} {
    %c0 = arith.constant 0 : index
    %c0_0 = arith.constant 0 : index
    %c0_1 = arith.constant 0 : index
    %c0_2 = arith.constant 0 : index
    %0 = vector.load %arg1[%c0, %c0_0, %c0_1, %c0_2] : memref<1x4x8x8xf32, #tpu.memory_space<vmem>>, vector<1x4x8x8xf32>
    %1 = vector.shape_cast %0 : vector<1x4x8x8xf32> to vector<4x8x8xf32>
    %2 = arith.truncf %1 : vector<4x8x8xf32> to vector<4x8x8xbf16>
    %c0_3 = arith.constant 0 : index
    %c0_4 = arith.constant 0 : index
    %c0_5 = arith.constant 0 : index
    %c0_6 = arith.constant 0 : index
    %3 = vector.load %arg2[%c0_3, %c0_4, %c0_5, %c0_6] : memref<1x4x8x8xf32, #tpu.memory_space<vmem>>, vector<1x4x8x8xf32>
    %4 = vector.shape_cast %3 : vector<1x4x8x8xf32> to vector<4x8x8xf32>
    %5 = arith.truncf %4 : vector<4x8x8xf32> to vector<4x8x8xbf16>
    %c0_7 = arith.constant 0 : index
    %c0_8 = arith.constant 0 : index
    %c0_9 = arith.constant 0 : index
    %c0_10 = arith.constant 0 : index
    %6 = vector.load %arg3[%c0_7, %c0_8, %c0_9, %c0_10] : memref<1x4x8x8xf32, #tpu.memory_space<vmem>>, vector<1x4x8x8xf32>
    %7 = vector.shape_cast %6 : vector<1x4x8x8xf32> to vector<4x8x8xf32>
    %8 = arith.truncf %7 : vector<4x8x8xf32> to vector<4x8x8xbf16>
    %cst = arith.constant dense<0.000000e+00> : vector<4x8x8xf32>
    %9 = tpu.matmul %2, %5, %cst {dimension_numbers = #tpu.dot_dimension_numbers<[2], [2], [1], [1], [0, 0, 0, 1, 1, 1], [0], [0]>} : vector<4x8x8xbf16>, vector<4x8x8xbf16>, vector<4x8x8xf32> -> vector<4x8x8xf32>
    %cst_11 = arith.constant 0.353553385 : f32
    %10 = vector.broadcast %cst_11 : f32 to vector<4x8x8xf32>
    %11 = arith.mulf %9, %10 : vector<4x8x8xf32>
    %c0_12 = arith.constant 0 : index
    %c0_13 = arith.constant 0 : index
    %c0_14 = arith.constant 0 : index
    %12 = vector.load %arg4[%c0_12, %c0_13, %c0_14] : memref<1x8x8xf32, #tpu.memory_space<vmem>>, vector<1x8x8xf32>
    %13 = vector.shape_cast %12 : vector<1x8x8xf32> to vector<8x8xf32>
    %14 = vector.shape_cast %13 : vector<8x8xf32> to vector<1x8x8xf32>
    %15 = vector.broadcast %14 : vector<1x8x8xf32> to vector<4x8x8xf32>
    %16 = arith.addf %11, %15 : vector<4x8x8xf32>
    %cst_15 = arith.constant dense<0xFF800000> : vector<4x8xf32>
    %17 = vector.multi_reduction <maximumf>, %16, %cst_15 [2] : vector<4x8x8xf32> to vector<4x8xf32>
    %18 = vector.shape_cast %17 : vector<4x8xf32> to vector<4x8x1xf32>
    %19 = vector.broadcast %18 : vector<4x8x1xf32> to vector<4x8x8xf32>
    %20 = arith.subf %16, %19 : vector<4x8x8xf32>
    %21 = math.exp %20 : vector<4x8x8xf32>
    %cst_16 = arith.constant dense<0.000000e+00> : vector<4x8xf32>
    %22 = vector.multi_reduction <add>, %21, %cst_16 [2] : vector<4x8x8xf32> to vector<4x8xf32>
    %23 = vector.shape_cast %22 : vector<4x8xf32> to vector<4x8x1xf32>
    %24 = tpu.reciprocal %23 : vector<4x8x1xf32> -> vector<4x8x1xf32>
    %25 = vector.broadcast %24 : vector<4x8x1xf32> to vector<4x8x8xf32>
    %26 = arith.mulf %21, %25 : vector<4x8x8xf32>
    %27 = arith.truncf %26 : vector<4x8x8xf32> to vector<4x8x8xbf16>
    %cst_17 = arith.constant dense<0.000000e+00> : vector<4x8x8xf32>
    %28 = tpu.matmul %27, %8, %cst_17 {dimension_numbers = #tpu.dot_dimension_numbers<[2], [1], [1], [2], [0, 0, 0, 1, 1, 2], [0], [0]>} : vector<4x8x8xbf16>, vector<4x8x8xbf16>, vector<4x8x8xf32> -> vector<4x8x8xf32>
    %c0_18 = arith.constant 0 : index
    %c0_19 = arith.constant 0 : index
    %c0_20 = arith.constant 0 : index
    %c0_21 = arith.constant 0 : index
    %29 = vector.load %arg5[%c0_18, %c0_19, %c0_20, %c0_21] : memref<1x4x8x8xf32, #tpu.memory_space<vmem>>, vector<1x4x8x8xf32>
    %30 = vector.shape_cast %29 : vector<1x4x8x8xf32> to vector<4x8x8xf32>
    %31 = vector.shape_cast %28 : vector<4x8x8xf32> to vector<1x4x8x8xf32>
    tpu.vector_store %arg5[%c0_18, %c0_19, %c0_20, %c0_21], %31 {strides = array<i32>} : memref<1x4x8x8xf32, #tpu.memory_space<vmem>>, vector<1x4x8x8xf32>,
    %c0_22 = arith.constant 0 : index
    %c0_23 = arith.constant 0 : index
    %c0_24 = arith.constant 0 : index
    %c0_25 = arith.constant 0 : index
    %32 = vector.load %arg6[%c0_22, %c0_23, %c0_24, %c0_25] : memref<1x4x8x8xf32, #tpu.memory_space<vmem>>, vector<1x4x8x8xf32>
    %33 = vector.shape_cast %32 : vector<1x4x8x8xf32> to vector<4x8x8xf32>
    %34 = vector.shape_cast %26 : vector<4x8x8xf32> to vector<1x4x8x8xf32>
    tpu.vector_store %arg6[%c0_22, %c0_23, %c0_24, %c0_25], %34 {strides = array<i32>} : memref<1x4x8x8xf32, #tpu.memory_space<vmem>>, vector<1x4x8x8xf32>,
    return
  }
  func.func @transform_0(%arg0: i32) -> (i32, i32, i32, i32) {
    %c0_i32 = arith.constant 0 : i32
    %c0_i32_0 = arith.constant 0 : i32
    %c0_i32_1 = arith.constant 0 : i32
    %c0_i32_2 = arith.constant 0 : i32
    return %arg0, %c0_i32, %c0_i32_0, %c0_i32_1 : i32, i32, i32, i32
  }
  func.func @transform_1(%arg0: i32) -> (i32, i32, i32, i32) {
    %c0_i32 = arith.constant 0 : i32
    %c0_i32_0 = arith.constant 0 : i32
    %c0_i32_1 = arith.constant 0 : i32
    %c0_i32_2 = arith.constant 0 : i32
    return %arg0, %c0_i32, %c0_i32_0, %c0_i32_1 : i32, i32, i32, i32
  }
  func.func @transform_2(%arg0: i32) -> (i32, i32, i32, i32) {
    %c0_i32 = arith.constant 0 : i32
    %c0_i32_0 = arith.constant 0 : i32
    %c0_i32_1 = arith.constant 0 : i32
    %c0_i32_2 = arith.constant 0 : i32
    return %arg0, %c0_i32, %c0_i32_0, %c0_i32_1 : i32, i32, i32, i32
  }
  func.func @transform_3(%arg0: i32) -> (i32, i32, i32) {
    %c0_i32 = arith.constant 0 : i32
    %c0_i32_0 = arith.constant 0 : i32
    %c0_i32_1 = arith.constant 0 : i32
    return %arg0, %c0_i32, %c0_i32_0 : i32, i32, i32
  }
  func.func @transform_4(%arg0: i32) -> (i32, i32, i32, i32) {
    %c0_i32 = arith.constant 0 : i32
    %c0_i32_0 = arith.constant 0 : i32
    %c0_i32_1 = arith.constant 0 : i32
    %c0_i32_2 = arith.constant 0 : i32
    return %arg0, %c0_i32, %c0_i32_0, %c0_i32_1 : i32, i32, i32, i32
  }
  func.func @transform_5(%arg0: i32) -> (i32, i32, i32, i32) {
    %c0_i32 = arith.constant 0 : i32
    %c0_i32_0 = arith.constant 0 : i32
    %c0_i32_1 = arith.constant 0 : i32
    %c0_i32_2 = arith.constant 0 : i32
    return %arg0, %c0_i32, %c0_i32_0, %c0_i32_1 : i32, i32, i32, i32
  }
}

module attributes {stable_mosaic.version = 11 : i64} {
  func.func @_linear_kernel(%arg0: i32, %arg1: i32, %arg2: memref<16x32xf32, #tpu.memory_space<vmem>>, %arg3: memref<32x32xbf16, #tpu.memory_space<vmem>>, %arg4: memref<1x32xf32, #tpu.memory_space<vmem>>, %arg5: memref<16x32xf32, #tpu.memory_space<vmem>>) attributes {dimension_semantics = [#tpu.dimension_semantics<parallel>, #tpu.dimension_semantics<parallel>], iteration_bounds = array<i64: 1, 1>, scalar_prefetch = 0 : i64, scratch_operands = 0 : i64, tpu.core_type = #tpu.core_type<tc>, window_params = [{transform_indices = @transform_0, window_bounds = array<i64: 16, 32>}, {transform_indices = @transform_1, window_bounds = array<i64: 32, 32>}, {transform_indices = @transform_2, window_bounds = array<i64: 1, 32>}, {transform_indices = @transform_3, window_bounds = array<i64: 16, 32>}]} {
    %c0 = arith.constant 0 : index
    %c0_0 = arith.constant 0 : index
    %0 = vector.load %arg2[%c0, %c0_0] : memref<16x32xf32, #tpu.memory_space<vmem>>, vector<16x32xf32>
    %1 = arith.truncf %0 : vector<16x32xf32> to vector<16x32xbf16>
    %c0_1 = arith.constant 0 : index
    %c0_2 = arith.constant 0 : index
    %2 = vector.load %arg3[%c0_1, %c0_2] : memref<32x32xbf16, #tpu.memory_space<vmem>>, vector<32x32xbf16>
    %cst = arith.constant dense<0.000000e+00> : vector<16x32xf32>
    %3 = tpu.matmul %1, %2, %cst {dimension_numbers = #tpu.dot_dimension_numbers<[1], [0], [0], [1], [0, 0, 1, 1], [], []>} : vector<16x32xbf16>, vector<32x32xbf16>, vector<16x32xf32> -> vector<16x32xf32>
    %c0_3 = arith.constant 0 : index
    %c0_4 = arith.constant 0 : index
    %4 = vector.load %arg4[%c0_3, %c0_4] : memref<1x32xf32, #tpu.memory_space<vmem>>, vector<1x32xf32>
    %5 = vector.broadcast %4 : vector<1x32xf32> to vector<16x32xf32>
    %6 = arith.addf %3, %5 : vector<16x32xf32>
    %c0_5 = arith.constant 0 : index
    %c0_6 = arith.constant 0 : index
    %7 = vector.load %arg5[%c0_5, %c0_6] : memref<16x32xf32, #tpu.memory_space<vmem>>, vector<16x32xf32>
    tpu.vector_store %arg5[%c0_5, %c0_6], %6 {strides = array<i32>} : memref<16x32xf32, #tpu.memory_space<vmem>>, vector<16x32xf32>,
    return
  }
  func.func @transform_0(%arg0: i32, %arg1: i32) -> (i32, i32) {
    %c0_i32 = arith.constant 0 : i32
    %c0_i32_0 = arith.constant 0 : i32
    return %arg0, %c0_i32 : i32, i32
  }
  func.func @transform_1(%arg0: i32, %arg1: i32) -> (i32, i32) {
    %c0_i32 = arith.constant 0 : i32
    %c0_i32_0 = arith.constant 0 : i32
    return %c0_i32, %arg1 : i32, i32
  }
  func.func @transform_2(%arg0: i32, %arg1: i32) -> (i32, i32) {
    %c0_i32 = arith.constant 0 : i32
    %c0_i32_0 = arith.constant 0 : i32
    return %c0_i32, %arg1 : i32, i32
  }
  func.func @transform_3(%arg0: i32, %arg1: i32) -> (i32, i32) {
    %c0_i32 = arith.constant 0 : i32
    return %arg0, %arg1 : i32, i32
  }
}

</mosaic_0001>

<bundles_post_ra>
// kernel: transformer_forward.33
= control target key start
LH: loop header
LB: loop body
LE: loop exit
PB: predicated region body
PF: predicated region fallthrough
CT: control target
= control target key end

     0   :  { %v112_v0 = vmov 0.0   ;;  %vm113_vm0 = vmmov 0   ;;  %vm41_vm1 = vcmask 261120   ;;  %vm86_vm2 = vcmask 785408   ;;  %s155_s1 = inlined_call_operand.vmem [shape: bf16[32,96], index: 1, kind: input, shape index: {}]   ;;  %s156_s0 = inlined_call_operand.vmem [shape: f32[16,32], index: 0, kind: input, shape index: {}]   ;;  %s157_s2 = inlined_call_operand.vmem [shape: f32[1,96], index: 2, kind: input, shape index: {}]   ;;  %s158_s3 = inlined_call_operand.vmem [shape: f32[16,96], index: 3, kind: output, shape index: {}]  }
   0x1   :  { %100 = vmatprep.subr.bf16.mxu0 %v112_v0  ;;  %v110_v1 = vld [vmem:[%s155_s1] sm:$0xff]   ;;  %104 = vmatprep.mubr.msk.bf16.mxu0 %vm113_vm0, %v112_v0  ;;  %v111_v2 = vld [vmem:[%s155_s1 + $0x8] sm:$0xff]  }
   0x2   :  { %101 = vmatpush3.bf16.msra.mxu0 %v110_v1  ;;  %v15_v3 = vld [vmem:[%s156_s0] sm:$0xff]  ;;  %v16_v4 = vld [vmem:[%s156_s0 + $0x8] sm:$0xff] }
   0x3   :  { %102 = vmatprep.subr.bf16.mxu0 %v112_v0  ;;  %v17_v5 = vpack.c.bf16 %v16_v4, %v15_v3  ;;  %v93_v6 = vld [vmem:[%s157_s2] ss:$0 sm:$0xff] }
   0x6   :  { %103 = vmatpush3.bf16.msra.mxu0 %v111_v2 }
   0x9   :  { %105 = vmatmul.mubr.msk.bf16.vlgmr.msra.gmra.mrb[0].mxu0 %vm41_vm1, %v17_v5 }
  0xdc   :  { %v79_v7 = vpop.f32.mrb[0].mxu0 }
  0xdd   :  { %v80_v8 = vadd.f32 %v93_v6, %v79_v7  ;;  %v106_v9 = vpop.f32.mrb[1].mxu0 }
  0xde   :  { %v82_v10 = vpop.f32.mrb[2].mxu0 }
  0xdf   :  { %87 = vst.msk [vmem:[%s158_s3] sm:$0xff] %vm86_vm2, %v80_v8  ;;  %v83_v11 = vadd.f32 %v93_v6, %v82_v10  ;;  %v107_v12 = vpop.f32.mrb[3].mxu0 }
  0xe1   :  { %88 = vst.msk [vmem:[%s158_s3 + $0x8] sm:$0xff] %vm86_vm2, %v83_v11 }

// kernel: transformer_forward.34
= control target key start
LH: loop header
LB: loop body
LE: loop exit
PB: predicated region body
PF: predicated region fallthrough
CT: control target
= control target key end

     0   :  { %s955_s15 = smov 0   ;;  %s1039_s0 = inlined_call_operand.vmem [shape: f32[2,4,8,8], index: 0, kind: input, shape index: {}]   ;;  %s1040_s1 = inlined_call_operand.vmem [shape: f32[2,4,8,8], index: 1, kind: input, shape index: {}]   ;;  %s1041_s2 = inlined_call_operand.vmem [shape: f32[2,4,8,8], index: 2, kind: input, shape index: {}]   ;;  %s1042_s3 = inlined_call_operand.vmem [shape: f32[2,8,8], index: 3, kind: input, shape index: {}]   ;;  %s1043_s4 = inlined_call_operand.vmem [shape: f32[2,4,8,8], index: 4, kind: output, shape index: {}]  }
   0x1 LB: > { %s802_s16 = sadd.s32 4294967295, %s926_s15   ;;  %p806_p0 = scmp.ge.s32.totalorder %s926_s15, 1  ;;  %s926_s15 = sphi %s955_s15, %s14_s15  }
   0x2   : > { %p191_p1 = scmp.lt.s32.totalorder %s926_s15, 3 }
   0x4   : > { %p192_p2 = pnand %p806_p0, %p191_p1 }
   0x5   : > { %p231_p3 = scmp.lt.s32.totalorder (!%p192_p2), %s802_s16, 1  ;;  %v928_v0 = vmov (!%p192_p2), 0.0   ;;  %vm929_vm0 = vmmov (!%p192_p2), 0   ;;  %vm280_vm1 = vcmask (!%p192_p2), 64512   ;;  %vm525_vm2 = vcmask (!%p192_p2), 1043456  }
   0x6   : > { %195 = sbr.rel (%p192_p2) target bundleno = 786 (0x312), region = 36  ;;  %846 = vmatprep.subr.bf16.mxu0 (!%p192_p2), %v928_v0  ;;  %852 = vmatprep.subr.bf16.mxu1 (!%p192_p2), %v928_v0 }
   0x7   : > { %848 = vmatprep.mubr.msk.bf16.mxu0 (!%p192_p2), %vm929_vm0, %v928_v0  ;;  %854 = vmatprep.mubr.msk.bf16.mxu1 (!%p192_p2), %vm929_vm0, %v928_v0 }
   0xd   : > { %s1045_s16 = smov (!%p231_p3, %s802_s16), 1 }
   0xe   : > { %s972_s17 = sshll.u32 %s1045_s16, 5  ;;  %s813_s24 = sshll.u32 %s1045_s16, 3 }
   0xf   : > { %s240_s20 = scalar_lea.vmem %s1040_s1, %s972_s17  ;;  %s235_s23 = scalar_lea.vmem %s1039_s0, %s972_s17 }
  0x10   : > { %v264_v1 = vld [vmem:[%s240_s20] sm:$0xff]  ;;  %v265_v2 = vld [vmem:[%s240_s20 + $0x8] sm:$0xff]  ;;  %v266_v5 = vld [vmem:[%s240_s20 + $0x10] sm:$0xff]  ;;  %s249_s27 = scalar_lea.vmem %s1042_s3, %s813_s24  ;;  %s245_s30 = scalar_lea.vmem %s1041_s2, %s972_s17 }
  0x11   : > { %v268_v3 = vpack.c.bf16 %v264_v1, %v264_v1  ;;  %v269_v4 = vpack.c.bf16 %v265_v2, %v265_v2  ;;  %v267_v6 = vld [vmem:[%s240_s20 + $0x18] sm:$0xff]  ;;  %v256_v9 = vld [vmem:[%s235_s23] sm:$0xff]  ;;  %v257_v10 = vld [vmem:[%s235_s23 + $0x8] sm:$0xff]  ;;  %v270_v11 = vpack.c.bf16 %v266_v5, %v266_v5  ;;  %s254_s7 = scalar_lea.vmem %s1043_s4, %s972_s17 }
  0x12   : > { %v271_v12 = vpack.c.bf16 %v267_v6, %v267_v6  ;;  %v260_v13 = vpack.c.bf16 %v256_v9, %v256_v9  ;;  %v261_v14 = vpack.c.bf16 %v257_v10, %v257_v10  ;;  %v258_v17 = vld [vmem:[%s235_s23 + $0x10] sm:$0xff]  ;;  %v259_v18 = vld [vmem:[%s235_s23 + $0x18] sm:$0xff]  ;;  %v469_v23 = vld [vmem:[%s249_s27] sm:$0xff] }
  0x13   : > { %v285_v7 = vsel %vm280_vm1, %v268_v3, 0  ;;  %v331_v8 = vsel %vm280_vm1, %v269_v4, 0  ;;  %v377_v15 = vsel %vm280_vm1, %v270_v11, 0  ;;  %v262_v19 = vpack.c.bf16 %v258_v17, %v258_v17  ;;  %v273_v10 = vld [vmem:[%s245_s30 + $0x8] sm:$0xff] }
  0x14   : > { %847 = vmatpush3.bf16.xpose.msra.mxu0 %v285_v7  ;;  %853 = vmatpush3.bf16.xpose.msra.mxu1 %v331_v8  ;;  %v423_v16 = vsel %vm280_vm1, %v271_v12, 0  ;;  %v263_v20 = vpack.c.bf16 %v259_v18, %v259_v18  ;;  %v272_v7 = vld [vmem:[%s245_s30] sm:$0xff]  ;;  %v277_v11 = vpack.c.bf16 %v273_v10, %v273_v10 }
  0x15   : > { %858 = vmatprep.subr.bf16.mxu0 %v928_v0  ;;  %864 = vmatprep.subr.bf16.mxu1 %v928_v0  ;;  %v276_v8 = vpack.c.bf16 %v272_v7, %v272_v7 }
  0x16   : > { %v573_v12 = vsel %vm525_vm2, %v277_v11, 0 }
  0x17   : > { %v527_v9 = vsel %vm525_vm2, %v276_v8, 0 }
  0x1b   : > { %849 = vmatmul.mubr.msk.bf16.vlgmr.msra.gmra.mrb[0].mxu0 %vm280_vm1, %v260_v13  ;;  %855 = vmatmul.mubr.msk.bf16.vlgmr.msra.gmra.mrb[0].mxu1 %vm280_vm1, %v261_v14  ;;  %v274_v13 = vld [vmem:[%s245_s30 + $0x10] sm:$0xff] }
  0x1c   : > { %859 = vmatpush3.bf16.xpose.msra.mxu0 %v377_v15  ;;  %865 = vmatpush3.bf16.xpose.msra.mxu1 %v423_v16  ;;  %v278_v14 = vpack.c.bf16 %v274_v13, %v274_v13  ;;  %v275_v16 = vld [vmem:[%s245_s30 + $0x18] sm:$0xff] }
  0x1d   : > { %860 = vmatprep.mubr.msk.bf16.mxu0 %vm929_vm0, %v928_v0  ;;  %866 = vmatprep.mubr.msk.bf16.mxu1 %vm929_vm0, %v928_v0  ;;  %v279_v17 = vpack.c.bf16 %v275_v16, %v275_v16 }
  0x1e   : > { %870 = vmatprep.subr.bf16.mxu0 %v928_v0  ;;  %876 = vmatprep.subr.bf16.mxu1 %v928_v0  ;;  %v619_v15 = vsel %vm525_vm2, %v278_v14, 0 }
  0x1f   : > { %v665_v18 = vsel %vm525_vm2, %v279_v17, 0 }
  0x23   : > { %861 = vmatmul.mubr.msk.bf16.vlgmr.msra.gmra.mrb[4].mxu0 %vm280_vm1, %v262_v19  ;;  %867 = vmatmul.mubr.msk.bf16.vlgmr.msra.gmra.mrb[4].mxu1 %vm280_vm1, %v263_v20 }
  0x24   : > { %872 = vmatprep.mubr.msk.bf16.mxu0 %vm929_vm0, %v928_v0  ;;  %878 = vmatprep.mubr.msk.bf16.mxu1 %vm929_vm0, %v928_v0 }
  0x25   : > { %871 = vmatpush3.bf16.msra.mxu0 %v527_v9  ;;  %877 = vmatpush3.bf16.msra.mxu1 %v573_v12 }
  0x26   : > { %882 = vmatprep.subr.bf16.mxu0 %v928_v0  ;;  %888 = vmatprep.subr.bf16.mxu1 %v928_v0 }
  0xee   : > { %v321_v21 = vpop.f32.mrb[0].mxu0  ;;  %v367_v22 = vpop.f32.mrb[0].mxu1 }
  0xef   : > { %v465_v24 = vmul.f32 0.35355338, %v321_v21  ;;  %v850_v25 = vpop.f32.mrb[1].mxu0  ;;  %v466_v26 = vmul.f32 0.35355338, %v367_v22  ;;  %v856_v27 = vpop.f32.mrb[1].mxu1 }
  0xf0   : > { %v324_v28 = vpop.f32.mrb[2].mxu0  ;;  %v370_v29 = vpop.f32.mrb[2].mxu1 }
  0xf1   : > { %v851_v30 = vpop.f32.mrb[3].mxu0  ;;  %v857_v31 = vpop.f32.mrb[3].mxu1  ;;  %v470_v32 = vadd.f32 %v469_v23, %v465_v24  ;;  %v471_v33 = vadd.f32 %v469_v23, %v466_v26 }
  0xf3   : > { %v474_v34 = vsel %vm280_vm1, %v470_v32, -inf  ;;  %v477_v35 = vsel %vm280_vm1, %v471_v33, -inf }
  0xf4   : > { %475 = vmax.xlane.f32.xlu0 %v474_v34 }
  0xf6   : > { %v413_v36 = vpop.f32.mrb[4].mxu0  ;;  %v459_v37 = vpop.f32.mrb[4].mxu1 }
  0xf7   : > { %v467_v38 = vmul.f32 0.35355338, %v413_v36  ;;  %v862_v39 = vpop.f32.mrb[5].mxu0  ;;  %v468_v40 = vmul.f32 0.35355338, %v459_v37  ;;  %v868_v41 = vpop.f32.mrb[5].mxu1 }
  0xf8   : > { %478 = vmax.xlane.f32.xlu0 %v477_v35  ;;  %v416_v42 = vpop.f32.mrb[6].mxu0  ;;  %v462_v43 = vpop.f32.mrb[6].mxu1 }
  0xf9   : > { %v863_v44 = vpop.f32.mrb[7].mxu0  ;;  %v869_v45 = vpop.f32.mrb[7].mxu1  ;;  %v472_v46 = vadd.f32 %v469_v23, %v467_v38  ;;  %v473_v47 = vadd.f32 %v469_v23, %v468_v40 }
  0xfb   : > { %v480_v48 = vsel %vm280_vm1, %v472_v46, -inf  ;;  %v483_v49 = vsel %vm280_vm1, %v473_v47, -inf }
  0xfc   : > { %481 = vmax.xlane.f32.xlu1 %v480_v48 }
 0x100   : > { %484 = vmax.xlane.f32.xlu1 %v483_v49 }
 0x181   : > { %v476_v50 = vpop.xlane.xlu0 %475 }
 0x182   : > { %v486_v51 = vsub.f32 %v470_v32, %v476_v50 }
 0x184   : > { %v490_v52 = vmul.f32 1.442695, %v486_v51 }
 0x185   : > { %v479_v53 = vpop.xlane.xlu0 %478 }
 0x186   : > { %904 = vpow2.f32 %v490_v52  ;;  %v487_v54 = vsub.f32 %v471_v33, %v479_v53 }
 0x188   : > { %v492_v55 = vmul.f32 1.442695, %v487_v54 }
 0x189   : > { %v482_v56 = vpop.xlane.xlu1 %481 }
 0x18a   : > { %906 = vpow2.f32 %v492_v55  ;;  %v488_v57 = vsub.f32 %v472_v46, %v482_v56 }
 0x18c   : > { %v494_v58 = vmul.f32 1.442695, %v488_v57 }
 0x18d   : > { %v485_v59 = vpop.xlane.xlu1 %484 }
 0x18e   : > { %908 = vpow2.f32 %v494_v58  ;;  %v489_v60 = vsub.f32 %v473_v47, %v485_v59 }
 0x190   : > { %v905_v61 = vpop.eup %904  ;;  %v496_v62 = vmul.f32 1.442695, %v489_v60 }
 0x191   : > { %v498_v63 = vsel %vm280_vm1, %v905_v61, 0.0 }
 0x192   : > { %910 = vpow2.f32 %v496_v62  ;;  %499 = vadd.xlane.f32.xlu0 %v498_v63 }
 0x194   : > { %v907_v1 = vpop.eup %906 }
 0x195   : > { %v501_v2 = vsel %vm280_vm1, %v907_v1, 0.0 }
 0x196   : > { %502 = vadd.xlane.f32.xlu1 %v501_v2 }
 0x198   : > { %v909_v3 = vpop.eup %908 }
 0x199   : > { %v504_v4 = vsel %vm280_vm1, %v909_v3, 0.0 }
 0x19a   : > { %505 = vadd.xlane.f32.xlu0 %v504_v4 }
 0x19c   : > { %v911_v5 = vpop.eup %910 }
 0x19d   : > { %v507_v6 = vsel %vm280_vm1, %v911_v5, 0.0 }
 0x19e   : > { %508 = vadd.xlane.f32.xlu1 %v507_v6 }
 0x21f   : > { %v500_v19 = vpop.xlane.xlu0 %499 }
 0x220   : > { %912 = vrcp.f32 %v500_v19 }
 0x223   : > { %v503_v20 = vpop.xlane.xlu1 %502 }
 0x224   : > { %914 = vrcp.f32 %v503_v20 }
 0x227   : > { %v506_v21 = vpop.xlane.xlu0 %505 }
 0x228   : > { %916 = vrcp.f32 %v506_v21 }
 0x22a   : > { %v913_v22 = vpop.eup %912 }
 0x22b   : > { %v514_v23 = vmul.f32 %v913_v22, %v905_v61  ;;  %v509_v24 = vpop.xlane.xlu1 %508 }
 0x22c   : > { %918 = vrcp.f32 %v509_v24 }
 0x22d   : > { %v518_v25 = vpack.c.bf16 %v514_v23, %v514_v23 }
 0x22e   : > { %v915_v26 = vpop.eup %914 }
 0x22f   : > { %v515_v27 = vmul.f32 %v915_v26, %v907_v1  ;;  %873 = vmatmul.mubr.msk.bf16.vlgmr.msra.gmra.mrb[8].mxu0 %vm280_vm1, %v518_v25 }
 0x230   : > { %883 = vmatpush3.bf16.msra.mxu0 %v619_v15  ;;  %884 = vmatprep.mubr.msk.bf16.mxu0 %vm929_vm0, %v928_v0 }
 0x231   : > { %v519_v28 = vpack.c.bf16 %v515_v27, %v515_v27 }
 0x232   : > { %v917_v29 = vpop.eup %916 }
 0x233   : > { %v516_v30 = vmul.f32 %v917_v29, %v909_v3  ;;  %879 = vmatmul.mubr.msk.bf16.vlgmr.msra.gmra.mrb[8].mxu1 %vm280_vm1, %v519_v28 }
 0x234   : > { %889 = vmatpush3.bf16.msra.mxu1 %v665_v18  ;;  %890 = vmatprep.mubr.msk.bf16.mxu1 %vm929_vm0, %v928_v0 }
 0x235   : > { %v520_v31 = vpack.c.bf16 %v516_v30, %v516_v30 }
 0x236   : > { %v919_v32 = vpop.eup %918 }
 0x237   : > { %v517_v33 = vmul.f32 %v919_v32, %v911_v5  ;;  %885 = vmatmul.mubr.msk.bf16.vlgmr.msra.gmra.mrb[12].mxu0 %vm280_vm1, %v520_v31 }
 0x239   : > { %v521_v34 = vpack.c.bf16 %v517_v33, %v517_v33 }
 0x23b   : > { %891 = vmatmul.mubr.msk.bf16.vlgmr.msra.gmra.mrb[12].mxu1 %vm280_vm1, %v521_v34 }
 0x302   : > { %v563_v35 = vpop.f32.mrb[8].mxu0 }
 0x303   : > { %707 = vst.msk [vmem:[%s254_s7] sm:$0xff] %vm280_vm1, %v563_v35  ;;  %v874_v36 = vpop.f32.mrb[9].mxu0 }
 0x304   : > { %v566_v37 = vpop.f32.mrb[10].mxu0 }
 0x305   : > { %v875_v38 = vpop.f32.mrb[11].mxu0 }
 0x306   : > { %v609_v39 = vpop.f32.mrb[8].mxu1 }
 0x307   : > { %708 = vst.msk [vmem:[%s254_s7 + $0x8] sm:$0xff] %vm280_vm1, %v609_v39  ;;  %v880_v0 = vpop.f32.mrb[9].mxu1 }
 0x308   : > { %v612_v40 = vpop.f32.mrb[10].mxu1 }
 0x309   : > { %v881_v41 = vpop.f32.mrb[11].mxu1 }
 0x30a   : > { %v655_v42 = vpop.f32.mrb[12].mxu0 }
 0x30b   : > { %709 = vst.msk [vmem:[%s254_s7 + $0x10] sm:$0xff] %vm280_vm1, %v655_v42  ;;  %v886_v43 = vpop.f32.mrb[13].mxu0 }
 0x30c   : > { %v658_v44 = vpop.f32.mrb[14].mxu0 }
 0x30d   : > { %v887_v45 = vpop.f32.mrb[15].mxu0 }
 0x30e   : > { %v701_v46 = vpop.f32.mrb[12].mxu1 }
 0x30f   : > { %710 = vst.msk [vmem:[%s254_s7 + $0x18] sm:$0xff] %vm280_vm1, %v701_v46  ;;  %v892_v47 = vpop.f32.mrb[13].mxu1 }
 0x310   : > { %v704_v48 = vpop.f32.mrb[14].mxu1 }
 0x311   : > { %v893_v49 = vpop.f32.mrb[15].mxu1 }
 0x312 PF: > { %s14_s15 = sadd.s32 1, %s926_s15  }
 0x313   : > { %p11_p4 = scmp.ge.s32.totalorder %s14_s15, 4  }
 0x315   :  { %13 = sbr.rel (!%p11_p4) target bundleno = 1 (0x1), region = 75 }

// kernel: transformer_forward.35
= control target key start
LH: loop header
LB: loop body
LE: loop exit
PB: predicated region body
PF: predicated region fallthrough
CT: control target
= control target key end

     0   :  { %v175_v0 = vmov 0.0   ;;  %vm176_vm0 = vmmov 0   ;;  %vm50_vm1 = vcmask 261120   ;;  %s252_s1 = inlined_call_operand.vmem [shape: bf16[32,32], index: 1, kind: input, shape index: {}]   ;;  %s253_s0 = inlined_call_operand.vmem [shape: f32[16,32], index: 0, kind: input, shape index: {}]   ;;  %s254_s2 = inlined_call_operand.vmem [shape: f32[1,32], index: 2, kind: input, shape index: {}]   ;;  %s255_s3 = inlined_call_operand.vmem [shape: f32[16,32], index: 3, kind: input, shape index: {}]   ;;  %s256_s4 = inlined_call_operand.vmem [shape: f32[1,32], index: 4, kind: input, shape index: {}]   ;;  %s257_s5 = inlined_call_operand.vmem [shape: f32[1,32], index: 5, kind: input, shape index: {}]   ;;  %s258_s6 = inlined_call_operand.vmem [shape: f32[16,32], index: 6, kind: output, shape index: {}]  }
   0x1   :  { %159 = vmatprep.subr.bf16.mxu0 %v175_v0  ;;  %v169_v1 = vld [vmem:[%s252_s1] sm:$0xff]   ;;  %163 = vmatprep.mubr.msk.bf16.mxu0 %vm176_vm0, %v175_v0  ;;  %v170_v2 = vld [vmem:[%s252_s1 + $0x8] sm:$0xff]  }
   0x2   :  { %160 = vmatpush3.bf16.msra.mxu0 %v169_v1  ;;  %v24_v3 = vld [vmem:[%s253_s0] sm:$0xff]  ;;  %v25_v4 = vld [vmem:[%s253_s0 + $0x8] sm:$0xff] }
   0x3   :  { %161 = vmatprep.subr.bf16.mxu0 %v175_v0  ;;  %v26_v5 = vpack.c.bf16 %v25_v4, %v24_v3  ;;  %v150_v6 = vld [vmem:[%s254_s2] ss:$0 sm:$0xff]  ;;  %v96_v12 = vld [vmem:[%s255_s3 + $0x8] sm:$0xff] }
   0x4   :  { %v95_v8 = vld [vmem:[%s255_s3] sm:$0xff] }
   0x5   :  { %v154_v36 = vld [vmem:[%s256_s4] ss:$0 sm:$0xff] }
   0x6   :  { %162 = vmatpush3.bf16.msra.mxu0 %v170_v2  ;;  %v155_v38 = vld [vmem:[%s257_s5] ss:$0 sm:$0xff] }
   0x9   :  { %164 = vmatmul.mubr.msk.bf16.vlgmr.msra.gmra.mrb[0].mxu0 %vm50_vm1, %v26_v5 }
  0xdc   :  { %v88_v7 = vpop.f32.mrb[0].mxu0 }
  0xdd   :  { %v89_v9 = vadd.f32 %v150_v6, %v88_v7  ;;  %v165_v10 = vpop.f32.mrb[1].mxu0 }
  0xde   :  { %v91_v11 = vpop.f32.mrb[2].mxu0 }
  0xdf   :  { %v92_v13 = vadd.f32 %v150_v6, %v91_v11  ;;  %v166_v14 = vpop.f32.mrb[3].mxu0  ;;  %v97_v15 = vadd.f32 %v95_v8, %v89_v9 }
  0xe1   :  { %v99_v16 = vsel %vm50_vm1, %v97_v15, 0.0  ;;  %v98_v17 = vadd.f32 %v96_v12, %v92_v13 }
  0xe2   :  { %100 = vadd.xlane.f32.xlu0 %v99_v16 }
  0xe3   :  { %v102_v18 = vsel %vm50_vm1, %v98_v17, 0.0 }
  0xe6   :  { %103 = vadd.xlane.f32.xlu0 %v102_v18 }
 0x16f   :  { %v101_v19 = vpop.xlane.xlu0 %100 }
 0x170   :  { %v106_v20 = vmul.f32 0.03125, %v101_v19 }
 0x172   :  { %v108_v21 = vsub.f32 %v97_v15, %v106_v20 }
 0x173   :  { %v104_v22 = vpop.xlane.xlu0 %103 }
 0x174   :  { %v107_v23 = vmul.f32 0.03125, %v104_v22  ;;  %v110_v24 = vmul.f32 %v108_v21, %v108_v21 }
 0x176   :  { %v109_v25 = vsub.f32 %v98_v17, %v107_v23  ;;  %v112_v26 = vsel %vm50_vm1, %v110_v24, 0.0 }
 0x177   :  { %113 = vadd.xlane.f32.xlu1 %v112_v26 }
 0x178   :  { %v111_v27 = vmul.f32 %v109_v25, %v109_v25 }
 0x17a   :  { %v115_v28 = vsel %vm50_vm1, %v111_v27, 0.0 }
 0x17b   :  { %116 = vadd.xlane.f32.xlu1 %v115_v28 }
 0x204   :  { %v114_v29 = vpop.xlane.xlu1 %113 }
 0x205   :  { %v118_v30 = vmul.f32 0.03125, %v114_v29 }
 0x207   :  { %v120_v31 = vadd.f32 1e-05, %v118_v30 }
 0x208   :  { %v117_v32 = vpop.xlane.xlu1 %116 }
 0x209   :  { %171 = vrsqrt.f32 %v120_v31  ;;  %v119_v33 = vmul.f32 0.03125, %v117_v32 }
 0x20b   :  { %v121_v34 = vadd.f32 1e-05, %v119_v33 }
 0x20d   :  { %173 = vrsqrt.f32 %v121_v34 }
 0x213   :  { %v172_v35 = vpop.eup %171 }
 0x214   :  { %v124_v37 = vmul.f32 %v172_v35, %v108_v21 }
 0x216   :  { %v133_v39 = vmul.f32 %v154_v36, %v124_v37 }
 0x217   :  { %v174_v40 = vpop.eup %173 }
 0x218   :  { %v142_v41 = vadd.f32 %v155_v38, %v133_v39  ;;  %v125_v42 = vmul.f32 %v174_v40, %v109_v25 }
 0x21a   :  { %144 = vst.msk [vmem:[%s258_s6] sm:$0xff] %vm50_vm1, %v142_v41  ;;  %v134_v43 = vmul.f32 %v154_v36, %v125_v42 }
 0x21c   :  { %v143_v44 = vadd.f32 %v155_v38, %v134_v43 }
 0x21e   :  { %145 = vst.msk [vmem:[%s258_s6 + $0x8] sm:$0xff] %vm50_vm1, %v143_v44 }

// kernel: transformer_forward.36
= control target key start
LH: loop header
LB: loop body
LE: loop exit
PB: predicated region body
PF: predicated region fallthrough
CT: control target
= control target key end

     0   :  { %v111_v0 = vmov 0.0   ;;  %vm112_vm0 = vmmov 0   ;;  %vm41_vm1 = vcmask 261120   ;;  %s154_s1 = inlined_call_operand.vmem [shape: bf16[32,32], index: 1, kind: input, shape index: {}]   ;;  %s155_s0 = inlined_call_operand.vmem [shape: f32[16,32], index: 0, kind: input, shape index: {}]   ;;  %s156_s2 = inlined_call_operand.vmem [shape: f32[1,32], index: 2, kind: input, shape index: {}]   ;;  %s157_s3 = inlined_call_operand.vmem [shape: f32[16,32], index: 3, kind: output, shape index: {}]  }
   0x1   :  { %99 = vmatprep.subr.bf16.mxu0 %v111_v0  ;;  %v109_v1 = vld [vmem:[%s154_s1] sm:$0xff]   ;;  %103 = vmatprep.mubr.msk.bf16.mxu0 %vm112_vm0, %v111_v0  ;;  %v110_v2 = vld [vmem:[%s154_s1 + $0x8] sm:$0xff]  }
   0x2   :  { %100 = vmatpush3.bf16.msra.mxu0 %v109_v1  ;;  %v15_v3 = vld [vmem:[%s155_s0] sm:$0xff]  ;;  %v16_v4 = vld [vmem:[%s155_s0 + $0x8] sm:$0xff] }
   0x3   :  { %101 = vmatprep.subr.bf16.mxu0 %v111_v0  ;;  %v17_v5 = vpack.c.bf16 %v16_v4, %v15_v3  ;;  %v92_v6 = vld [vmem:[%s156_s2] ss:$0 sm:$0xff] }
   0x6   :  { %102 = vmatpush3.bf16.msra.mxu0 %v110_v2 }
   0x9   :  { %104 = vmatmul.mubr.msk.bf16.vlgmr.msra.gmra.mrb[0].mxu0 %vm41_vm1, %v17_v5 }
  0xdc   :  { %v79_v7 = vpop.f32.mrb[0].mxu0 }
  0xdd   :  { %v80_v8 = vadd.f32 %v92_v6, %v79_v7  ;;  %v105_v9 = vpop.f32.mrb[1].mxu0 }
  0xde   :  { %v82_v10 = vpop.f32.mrb[2].mxu0 }
  0xdf   :  { %86 = vst.msk [vmem:[%s157_s3] sm:$0xff] %vm41_vm1, %v80_v8  ;;  %v83_v11 = vadd.f32 %v92_v6, %v82_v10  ;;  %v106_v12 = vpop.f32.mrb[3].mxu0 }
  0xe1   :  { %87 = vst.msk [vmem:[%s157_s3 + $0x8] sm:$0xff] %vm41_vm1, %v83_v11 }

// kernel: transformer_forward.37
= control target key start
LH: loop header
LB: loop body
LE: loop exit
PB: predicated region body
PF: predicated region fallthrough
CT: control target
= control target key end

     0   :  { %v112_v0 = vmov 0.0   ;;  %vm113_vm0 = vmmov 0   ;;  %vm41_vm1 = vcmask 261120   ;;  %vm86_vm2 = vcmask 523264   ;;  %s155_s1 = inlined_call_operand.vmem [shape: bf16[32,64], index: 1, kind: input, shape index: {}]   ;;  %s156_s0 = inlined_call_operand.vmem [shape: f32[16,32], index: 0, kind: input, shape index: {}]   ;;  %s157_s2 = inlined_call_operand.vmem [shape: f32[1,64], index: 2, kind: input, shape index: {}]   ;;  %s158_s3 = inlined_call_operand.vmem [shape: f32[16,64], index: 3, kind: output, shape index: {}]  }
   0x1   :  { %100 = vmatprep.subr.bf16.mxu0 %v112_v0  ;;  %v110_v1 = vld [vmem:[%s155_s1] sm:$0xff]   ;;  %104 = vmatprep.mubr.msk.bf16.mxu0 %vm113_vm0, %v112_v0  ;;  %v111_v2 = vld [vmem:[%s155_s1 + $0x8] sm:$0xff]  }
   0x2   :  { %101 = vmatpush3.bf16.msra.mxu0 %v110_v1  ;;  %v15_v3 = vld [vmem:[%s156_s0] sm:$0xff]  ;;  %v16_v4 = vld [vmem:[%s156_s0 + $0x8] sm:$0xff] }
   0x3   :  { %102 = vmatprep.subr.bf16.mxu0 %v112_v0  ;;  %v17_v5 = vpack.c.bf16 %v16_v4, %v15_v3  ;;  %v93_v6 = vld [vmem:[%s157_s2] ss:$0 sm:$0xff] }
   0x6   :  { %103 = vmatpush3.bf16.msra.mxu0 %v111_v2 }
   0x9   :  { %105 = vmatmul.mubr.msk.bf16.vlgmr.msra.gmra.mrb[0].mxu0 %vm41_vm1, %v17_v5 }
  0xdc   :  { %v79_v7 = vpop.f32.mrb[0].mxu0 }
  0xdd   :  { %v80_v8 = vadd.f32 %v93_v6, %v79_v7  ;;  %v106_v9 = vpop.f32.mrb[1].mxu0 }
  0xde   :  { %v82_v10 = vpop.f32.mrb[2].mxu0 }
  0xdf   :  { %87 = vst.msk [vmem:[%s158_s3] sm:$0xff] %vm86_vm2, %v80_v8  ;;  %v83_v11 = vadd.f32 %v93_v6, %v82_v10  ;;  %v107_v12 = vpop.f32.mrb[3].mxu0 }
  0xe1   :  { %88 = vst.msk [vmem:[%s158_s3 + $0x8] sm:$0xff] %vm86_vm2, %v83_v11 }

// kernel: transformer_forward.28
= control target key start
LH: loop header
LB: loop body
LE: loop exit
PB: predicated region body
PF: predicated region fallthrough
CT: control target
= control target key end

     0   :  { %v290_v0 = vmov 0.0   ;;  %vm291_vm0 = vmmov 0   ;;  %vm53_vm1 = vcmask 261120   ;;  %vm140_vm2 = vcmask 523264   ;;  %s381_s1 = inlined_call_operand.vmem [shape: bf16[32,64], index: 1, kind: input, shape index: {}]   ;;  %s382_s0 = inlined_call_operand.vmem [shape: f32[16,32], index: 0, kind: input, shape index: {}]   ;;  %s383_s3 = inlined_call_operand.vmem [shape: bf16[64,32], index: 3, kind: input, shape index: {}]   ;;  %s384_s2 = inlined_call_operand.vmem [shape: f32[1,64], index: 2, kind: input, shape index: {}]   ;;  %s385_s4 = inlined_call_operand.vmem [shape: f32[1,32], index: 4, kind: input, shape index: {}]   ;;  %s386_s5 = inlined_call_operand.vmem [shape: f32[1,32], index: 5, kind: input, shape index: {}]   ;;  %s387_s6 = inlined_call_operand.vmem [shape: f32[1,32], index: 6, kind: input, shape index: {}]   ;;  %s388_s7 = inlined_call_operand.vmem [shape: f32[16,32], index: 7, kind: output, shape index: {}]  }
   0x1   :  { %258 = vmatprep.subr.bf16.mxu0 %v290_v0  ;;  %v280_v1 = vld [vmem:[%s381_s1] sm:$0xff]   ;;  %262 = vmatprep.mubr.msk.bf16.mxu0 %vm291_vm0, %v290_v0  ;;  %v281_v2 = vld [vmem:[%s381_s1 + $0x8] sm:$0xff]   ;;  %v284_v8 = vld [vmem:[%s383_s3 + $0x10] sm:$0xff]  }
   0x2   :  { %266 = vmatprep.subr.bf16.mxu1 %v290_v0  ;;  %274 = vmatprep.mubr.msk.bf16.mxu1 %vm291_vm0, %v290_v0  ;;  %v27_v3 = vld [vmem:[%s382_s0] sm:$0xff]  ;;  %v28_v4 = vld [vmem:[%s382_s0 + $0x8] sm:$0xff]  ;;  %v285_v9 = vld [vmem:[%s383_s3 + $0x18] sm:$0xff]  }
   0x3   :  { %259 = vmatpush3.bf16.msra.mxu0 %v280_v1  ;;  %v282_v5 = vld [vmem:[%s383_s3] sm:$0xff]   ;;  %v283_v6 = vld [vmem:[%s383_s3 + $0x8] sm:$0xff]   ;;  %v29_v7 = vpack.c.bf16 %v28_v4, %v27_v3 }
   0x4   :  { %260 = vmatprep.subr.bf16.mxu0 %v290_v0  ;;  %267 = vmatpush3.bf16.msra.mxu1 %v282_v5  ;;  %v238_v10 = vld [vmem:[%s384_s2] ss:$0 sm:$0xff] }
   0x5   :  { %268 = vmatprep.subr.bf16.mxu1 %v290_v0  ;;  %v242_v20 = vld [vmem:[%s385_s4] ss:$0 sm:$0xff] }
   0x6   :  { %v248_v48 = vld [vmem:[%s386_s5] ss:$0 sm:$0xff] }
   0x7   :  { %261 = vmatpush3.bf16.msra.mxu0 %v281_v2  ;;  %v249_v50 = vld [vmem:[%s387_s6] ss:$0 sm:$0xff] }
   0x8   :  { %269 = vmatpush3.bf16.msra.mxu1 %v283_v6 }
   0x9   :  { %270 = vmatprep.subr.bf16.mxu1 %v290_v0 }
   0xa   :  { %263 = vmatmul.mubr.msk.bf16.vlgmr.msra.gmra.mrb[0].mxu0 %vm53_vm1, %v29_v7 }
   0xc   :  { %271 = vmatpush3.bf16.msra.mxu1 %v284_v8 }
   0xd   :  { %272 = vmatprep.subr.bf16.mxu1 %v290_v0 }
  0x10   :  { %273 = vmatpush3.bf16.msra.mxu1 %v285_v9 }
  0xdd   :  { %v91_v11 = vpop.f32.mrb[0].mxu0 }
  0xde   :  { %v92_v12 = vadd.f32 %v238_v10, %v91_v11  ;;  %v264_v13 = vpop.f32.mrb[1].mxu0 }
  0xdf   :  { %v94_v14 = vpop.f32.mrb[2].mxu0 }
  0xe0   :  { %v95_v15 = vadd.f32 %v238_v10, %v94_v14  ;;  %v265_v16 = vpop.f32.mrb[3].mxu0  ;;  %v98_v17 = vmax.f32 %v92_v12, 0.0 }
  0xe2   :  { %v99_v18 = vmax.f32 %v95_v15, 0.0 }
  0xe4   :  { %v100_v19 = vpack.c.bf16 %v99_v18, %v98_v17 }
  0xe6   :  { %275 = vmatmul.mubr.msk.bf16.vlgmr.msra.gmra.mrb[0].mxu1 %vm140_vm2, %v100_v19 }
 0x1b9   :  { %v178_v21 = vpop.f32.mrb[0].mxu1 }
 0x1ba   :  { %v179_v22 = vadd.f32 %v242_v20, %v178_v21  ;;  %v276_v23 = vpop.f32.mrb[1].mxu1 }
 0x1bb   :  { %v181_v24 = vpop.f32.mrb[2].mxu1 }
 0x1bc   :  { %v182_v25 = vadd.f32 %v242_v20, %v181_v24  ;;  %v277_v26 = vpop.f32.mrb[3].mxu1  ;;  %v185_v27 = vadd.f32 %v179_v22, %v27_v3 }
 0x1be   :  { %v187_v28 = vsel %vm53_vm1, %v185_v27, 0.0  ;;  %v186_v29 = vadd.f32 %v182_v25, %v28_v4 }
 0x1bf   :  { %188 = vadd.xlane.f32.xlu0 %v187_v28 }
 0x1c0   :  { %v190_v30 = vsel %vm53_vm1, %v186_v29, 0.0 }
 0x1c3   :  { %191 = vadd.xlane.f32.xlu0 %v190_v30 }
 0x24c   :  { %v189_v31 = vpop.xlane.xlu0 %188 }
 0x24d   :  { %v194_v32 = vmul.f32 0.03125, %v189_v31 }
 0x24f   :  { %v196_v33 = vsub.f32 %v185_v27, %v194_v32 }
 0x250   :  { %v192_v34 = vpop.xlane.xlu0 %191 }
 0x251   :  { %v195_v35 = vmul.f32 0.03125, %v192_v34  ;;  %v198_v36 = vmul.f32 %v196_v33, %v196_v33 }
 0x253   :  { %v197_v37 = vsub.f32 %v186_v29, %v195_v35  ;;  %v200_v38 = vsel %vm53_vm1, %v198_v36, 0.0 }
 0x254   :  { %201 = vadd.xlane.f32.xlu1 %v200_v38 }
 0x255   :  { %v199_v39 = vmul.f32 %v197_v37, %v197_v37 }
 0x257   :  { %v203_v40 = vsel %vm53_vm1, %v199_v39, 0.0 }
 0x258   :  { %204 = vadd.xlane.f32.xlu1 %v203_v40 }
 0x2e1   :  { %v202_v41 = vpop.xlane.xlu1 %201 }
 0x2e2   :  { %v206_v42 = vmul.f32 0.03125, %v202_v41 }
 0x2e4   :  { %v208_v43 = vadd.f32 1e-05, %v206_v42 }
 0x2e5   :  { %v205_v44 = vpop.xlane.xlu1 %204 }
 0x2e6   :  { %286 = vrsqrt.f32 %v208_v43  ;;  %v207_v45 = vmul.f32 0.03125, %v205_v44 }
 0x2e8   :  { %v209_v46 = vadd.f32 1e-05, %v207_v45 }
 0x2ea   :  { %288 = vrsqrt.f32 %v209_v46 }
 0x2f0   :  { %v287_v47 = vpop.eup %286 }
 0x2f1   :  { %v212_v49 = vmul.f32 %v287_v47, %v196_v33 }
 0x2f3   :  { %v221_v51 = vmul.f32 %v248_v48, %v212_v49 }
 0x2f4   :  { %v289_v52 = vpop.eup %288 }
 0x2f5   :  { %v230_v53 = vadd.f32 %v249_v50, %v221_v51  ;;  %v213_v54 = vmul.f32 %v289_v52, %v197_v37 }
 0x2f7   :  { %232 = vst.msk [vmem:[%s388_s7] sm:$0xff] %vm53_vm1, %v230_v53  ;;  %v222_v55 = vmul.f32 %v248_v48, %v213_v54 }
 0x2f9   :  { %v231_v56 = vadd.f32 %v249_v50, %v222_v55 }
 0x2fb   :  { %233 = vst.msk [vmem:[%s388_s7 + $0x8] sm:$0xff] %vm53_vm1, %v231_v56 }

// kernel: transformer_forward.49
= control target key start
LH: loop header
LB: loop body
LE: loop exit
PB: predicated region body
PF: predicated region fallthrough
CT: control target
= control target key end

     0   :  { %v151_v1 = vmov 0.0   ;;  %vm152_vm0 = vmmov 0   ;;  %s203_s0 = inlined_call_operand.vmem [shape: f32[16,32], index: 0, kind: input, shape index: {}]   ;;  %s204_s1 = inlined_call_operand.vmem [shape: bf16[32,32], index: 1, kind: input, shape index: {}]   ;;  %s205_s2 = inlined_call_operand.vmem [shape: f32[1,32], index: 2, kind: input, shape index: {}]   ;;  %s206_s3 = inlined_call_operand.hbm [shape: f32[16,32], index: 3, kind: output, shape index: {}]  }
   0x1   :  { %v125_v0 = vld [vmem:[%s204_s1] sm:$0xff]   ;;  %112 = vmatprep.subr.bf16.mxu0 %v151_v1  ;;  %v126_v2 = vld [vmem:[%s204_s1 + $0x8] sm:$0xff]   ;;  %116 = vmatprep.mubr.msk.bf16.mxu0 %vm152_vm0, %v151_v1 }
   0x2   :  { %113 = vmatpush3.bf16.msra.mxu0 %v125_v0  ;;  %v16_v3 = vld [vmem:[%s203_s0] sm:$0xff]  ;;  %v17_v4 = vld [vmem:[%s203_s0 + $0x8] sm:$0xff] }
   0x3   :  { %114 = vmatprep.subr.bf16.mxu0 %v151_v1 }
   0x4   :  { %8 = vsyncpa [#allocation3], 0  ;;  %v18_v5 = vpack.c.bf16 %v17_v4, %v16_v3  ;;  %vm42_vm1 = vcmask 261120   ;;  %v105_v6 = vld [vmem:[%s205_s2] ss:$0 sm:$0xff]  ;;  %s153_s1 = smov [#allocation2]  }
   0x5   :  { %s94_s22 = sshll.u32 %s153_s1, 4  ;;  %s95_s22 = int_to_ptr.vmem [resolvable:$true] %s94_s22 }
   0x6   :  { %115 = vmatpush3.bf16.msra.mxu0 %v126_v2  ;;  %s127_s0 = scalar_lea.vmem %s95_s22, 256  ;;  %p132_p1 = scmp.lt.s32.totalorder %s95_s22, %s95_s22 }
   0x7   :  { %p128_p0 = scmp.ne.s32.totalorder %s95_s22, %s127_s0  ;;  %p133_p2 = scmp.lt.s32.totalorder %s127_s0, %s127_s0 }
   0x9   :  { %117 = vmatmul.mubr.msk.bf16.vlgmr.msra.gmra.mrb[0].mxu0 %vm42_vm1, %v18_v5  ;;  %p134_p3 = por %p133_p2, %p132_p1 }
   0xb   :  { %p135_p4 = pnand %p134_p3, %p128_p0 }
  0xdc   :  { %v80_v7 = vpop.f32.mrb[0].mxu0 }
  0xdd   :  { %v81_v8 = vadd.f32 %v105_v6, %v80_v7  ;;  %v118_v9 = vpop.f32.mrb[1].mxu0 }
  0xde   :  { %v83_v10 = vpop.f32.mrb[2].mxu0 }
  0xdf   :  { %87 = vst.msk [vmem:[#allocation2] sm:$0xff] %vm42_vm1, %v81_v8  ;;  %v84_v11 = vadd.f32 %v105_v6, %v83_v10  ;;  %v119_v12 = vpop.f32.mrb[3].mxu0 }
  0xe1   :  { %88 = vst.msk [vmem:[#allocation2 + $0x8] sm:$0xff] %vm42_vm1, %v84_v11 }
  0xe2   :  { %138 = shalt.err (!%p135_p4)
}
  0xe3   :  { %s139_s24 = scalar_lea.hbm %s206_s3, 256 }
  0xe4   :  { %p140_p5 = scmp.ne.s32.totalorder %s206_s3, %s139_s24  ;;  %p143_p6 = scmp.lt.u32.totalorder %s139_s24, %s206_s3 }
  0xe6   :  { %p145_p7 = pnand %p143_p6, %p140_p5 }
  0xe8   :  { %148 = shalt.err (!%p145_p7)
}
  0xe9   :  { %s154_s29 = smov 128   ;;  %s155_s30 = smov 8  }
  0xea   :  { %100 = dma.vmem_to_hbm [thread:$0]  %s95_s22, 256, %s206_s3, [#allocation3], %s154_s29, %s154_s29, %s155_s30  }
  0xeb   :  { %149 = dma.done.wait [#allocation3], 256  }
  0xec   :  { %150 = vsyncadd [#allocation3], 4294967040 }
  0xed   :  { %104 = vsyncpa [#allocation3], 1 }

// kernel: transformer_forward.46
= control target key start
LH: loop header
LB: loop body
LE: loop exit
PB: predicated region body
PF: predicated region fallthrough
CT: control target
= control target key end

     0   :  { %11 = vsyncpa [#allocation3], 0  ;;  %s1333_s0 = inlined_call_operand.vmem [shape: f32[2,4,8,8], index: 0, kind: input, shape index: {}]   ;;  %s1334_s1 = inlined_call_operand.vmem [shape: f32[2,4,8,8], index: 1, kind: input, shape index: {}]   ;;  %s1335_s2 = inlined_call_operand.vmem [shape: f32[2,4,8,8], index: 2, kind: input, shape index: {}]   ;;  %s1336_s3 = inlined_call_operand.vmem [shape: f32[2,8,8], index: 3, kind: input, shape index: {}]   ;;  %s1337_s4 = inlined_call_operand.vmem [shape: f32[2,4,8,8], index: 4, kind: output, shape index: {0}]   ;;  %s1338_s5 = inlined_call_operand.hbm [shape: f32[2,4,8,8], index: 5, kind: output, shape index: {1}]  }
   0x1   :  { %13 = vsyncpa [#allocation3 + $0x1], 0  ;;  %s1152_s18 = smov 0   ;;  %s1154_s19 = smov 0  }
   0x2   :  { %s1156_s20 = smov 0   ;;  %s1158_s21 = smov 0  }
   0x3 LB: > { %s1173_s22 = sadd.s32 4294967295, %s1115_s21   ;;  %s898_s23 = sadd.s32 4294967294, %s1115_s21   ;;  %s1115_s21 = sphi %s1158_s21, %s1344_s21   ;;  %s1111_s20 = sphi %s1156_s20, %s1343_s20   ;;  %s1107_s19 = sphi %s1154_s19, %s1342_s19   ;;  %s1103_s18 = sphi %s1152_s18, %s1341_s18  }
   0x4   : > { %s1177_s24 = sadd.s32 1, %s1115_s21   ;;  %s156_s25 = sadd.s32 1, %s1111_s20 }
   0x5   : > { %s153_s26 = ssub.s32 %s1115_s21, %s1177_s24  ;;  %p166_p0 = scmp.ne.s32.totalorder %s1111_s20, %s1107_s19 }
   0x6   : > { %p154_p1 = scmp.eq.s32.totalorder %s153_s26, 0  ;;  %p167_p2 = scmp.eq.s32.totalorder %s1173_s22, 1 }
   0x7   : > { %p172_p3 = scmp.ne.s32.totalorder %s1107_s19, %s1103_s18  ;;  %p173_p4 = scmp.eq.s32.totalorder %s898_s23, 1 }
   0x8   : > { %s1188_s27 = scalar_select %p154_p1, %s1111_s20, %s156_s25  }
   0x9   : > { %p1190_p5 = por %p167_p2, %p166_p0  ;;  %p1194_p6 = por %p173_p4, %p172_p3 }
   0xa   : > { %p901_p7 = scmp.ge.s32.totalorder %s1115_s21, 1  ;;  %p222_p8 = scmp.lt.s32.totalorder %s1115_s21, 3 }
   0xc   : > { %p223_p9 = pnand %p901_p7, %p222_p8 }
   0xd   : > { %p269_p10 = scmp.lt.s32.totalorder (!%p223_p9), %s1173_s22, 1  ;;  %v1117_v0 = vmov (!%p223_p9), 0.0   ;;  %vm1118_vm0 = vmmov (!%p223_p9), 0   ;;  %vm318_vm1 = vcmask (!%p223_p9), 64512   ;;  %vm563_vm2 = vcmask (!%p223_p9), 1043456   ;;  %s266_s26 = sand.u32 (!%p223_p9), 1, %s1107_s19  }
   0xe   : > { %226 = sbr.rel (%p223_p9) target bundleno = 795 (0x31b), region = 36  ;;  %946 = vmatprep.subr.bf16.mxu0 (!%p223_p9), %v1117_v0  ;;  %952 = vmatprep.subr.bf16.mxu1 (!%p223_p9), %v1117_v0  ;;  %s929_s8 = sshll.u32 (!%p223_p9), %s1173_s22, 9 }
   0xf   : > { %948 = vmatprep.mubr.msk.bf16.mxu0 (!%p223_p9), %vm1118_vm0, %v1117_v0  ;;  %954 = vmatprep.mubr.msk.bf16.mxu1 (!%p223_p9), %vm1118_vm0, %v1117_v0 }
  0x15   : > { %s1204_s30 = scalar_select %p269_p10, %s1173_s22, 1 }
  0x16   : > { %s1119_s22 = smov [#allocation2]  }
  0x17   : > { %s1211_s6 = sshll.u32 %s1204_s30, 5  ;;  %s909_s13 = sshll.u32 %s1204_s30, 3 }
  0x18   : > { %s278_s9 = scalar_lea.vmem %s1334_s1, %s1211_s6  ;;  %s273_s12 = scalar_lea.vmem %s1333_s0, %s1211_s6 }
  0x19   : > { %v302_v1 = vld [vmem:[%s278_s9] sm:$0xff]  ;;  %v303_v2 = vld [vmem:[%s278_s9 + $0x8] sm:$0xff]  ;;  %v304_v5 = vld [vmem:[%s278_s9 + $0x10] sm:$0xff]  ;;  %s287_s16 = scalar_lea.vmem %s1336_s3, %s909_s13  ;;  %s283_s25 = scalar_lea.vmem %s1335_s2, %s1211_s6 }
  0x1a   : > { %v306_v3 = vpack.c.bf16 %v302_v1, %v302_v1  ;;  %v307_v4 = vpack.c.bf16 %v303_v2, %v303_v2  ;;  %v305_v6 = vld [vmem:[%s278_s9 + $0x18] sm:$0xff]  ;;  %v294_v9 = vld [vmem:[%s273_s12] sm:$0xff]  ;;  %v295_v10 = vld [vmem:[%s273_s12 + $0x8] sm:$0xff]  ;;  %v308_v11 = vpack.c.bf16 %v304_v5, %v304_v5  ;;  %s902_s30 = sshll.u32 %s266_s26, 5  ;;  %s1284_s13 = scalar_lea.sflag [#allocation3], %s266_s26 }
  0x1b   : > { %v309_v12 = vpack.c.bf16 %v305_v6, %v305_v6  ;;  %v298_v13 = vpack.c.bf16 %v294_v9, %v294_v9  ;;  %v299_v14 = vpack.c.bf16 %v295_v10, %v295_v10  ;;  %v296_v17 = vld [vmem:[%s273_s12 + $0x10] sm:$0xff]  ;;  %v297_v18 = vld [vmem:[%s273_s12 + $0x18] sm:$0xff]  ;;  %v507_v23 = vld [vmem:[%s287_s16] sm:$0xff]  ;;  %s268_s7 = scalar_lea.vmem [#allocation2], %s902_s30  ;;  %s1278_s12 = scalar_lea.hbm %s1338_s5, %s929_s8 }
  0x1c   : > { %v323_v7 = vsel %vm318_vm1, %v306_v3, 0  ;;  %v369_v8 = vsel %vm318_vm1, %v307_v4, 0  ;;  %v415_v15 = vsel %vm318_vm1, %v308_v11, 0  ;;  %v300_v19 = vpack.c.bf16 %v296_v17, %v296_v17  ;;  %v311_v10 = vld [vmem:[%s283_s25 + $0x8] sm:$0xff]  ;;  %s775_s9 = sshll.u32 %s268_s7, 4  ;;  %s1057_s15 = sshll.u32 %s1119_s22, 4  ;;  %s1280_s9 = int_to_ptr.vmem [resolvable:$true] %s775_s9  ;;  %s1058_s15 = int_to_ptr.vmem [resolvable:$false] %s1057_s15 }
  0x1d   : > { %947 = vmatpush3.bf16.xpose.msra.mxu0 %v323_v7  ;;  %953 = vmatpush3.bf16.xpose.msra.mxu1 %v369_v8  ;;  %v461_v16 = vsel %vm318_vm1, %v309_v12, 0  ;;  %v301_v20 = vpack.c.bf16 %v297_v18, %v297_v18  ;;  %v310_v7 = vld [vmem:[%s283_s25] sm:$0xff]  ;;  %v315_v11 = vpack.c.bf16 %v311_v10, %v311_v10  ;;  %s1053_s14 = scalar_lea.vmem %s1280_s9, 512  ;;  %s1059_s16 = scalar_lea.vmem %s1058_s15, 1024 }
  0x1e   : > { %958 = vmatprep.subr.bf16.mxu0 %v1117_v0  ;;  %964 = vmatprep.subr.bf16.mxu1 %v1117_v0  ;;  %v314_v8 = vpack.c.bf16 %v310_v7, %v310_v7  ;;  %p1054_p11 = scmp.ne.s32.totalorder %s1280_s9, %s1053_s14  ;;  %p1060_p0 = scmp.lt.s32.totalorder %s1280_s9, %s1058_s15 }
  0x1f   : > { %v611_v12 = vsel %vm563_vm2, %v315_v11, 0  ;;  %p1061_p1 = scmp.lt.s32.totalorder %s1059_s16, %s1053_s14 }
  0x20   : > { %v565_v9 = vsel %vm563_vm2, %v314_v8, 0  ;;  %p1055_p12 = pnand %p1054_p11, %p1190_p5 }
  0x21   : > { %p1062_p2 = por %p1061_p1, %p1060_p0 }
  0x22   : > { %p1056_p13 = pneg %p1055_p12 }
  0x24   : > { %949 = vmatmul.mubr.msk.bf16.vlgmr.msra.gmra.mrb[0].mxu0 %vm318_vm1, %v298_v13  ;;  %955 = vmatmul.mubr.msk.bf16.vlgmr.msra.gmra.mrb[0].mxu1 %vm318_vm1, %v299_v14  ;;  %v312_v13 = vld [vmem:[%s283_s25 + $0x10] sm:$0xff]  ;;  %p1063_p3 = pnand %p1062_p2, %p1056_p13 }
  0x25   : > { %959 = vmatpush3.bf16.xpose.msra.mxu0 %v415_v15  ;;  %965 = vmatpush3.bf16.xpose.msra.mxu1 %v461_v16  ;;  %v316_v14 = vpack.c.bf16 %v312_v13, %v312_v13  ;;  %v313_v16 = vld [vmem:[%s283_s25 + $0x18] sm:$0xff] }
  0x26   : > { %960 = vmatprep.mubr.msk.bf16.mxu0 %vm1118_vm0, %v1117_v0  ;;  %966 = vmatprep.mubr.msk.bf16.mxu1 %vm1118_vm0, %v1117_v0  ;;  %v317_v17 = vpack.c.bf16 %v313_v16, %v313_v16 }
  0x27   : > { %970 = vmatprep.subr.bf16.mxu0 %v1117_v0  ;;  %976 = vmatprep.subr.bf16.mxu1 %v1117_v0  ;;  %v657_v15 = vsel %vm563_vm2, %v316_v14, 0 }
  0x28   : > { %v703_v18 = vsel %vm563_vm2, %v317_v17, 0 }
  0x2c   : > { %961 = vmatmul.mubr.msk.bf16.vlgmr.msra.gmra.mrb[4].mxu0 %vm318_vm1, %v300_v19  ;;  %967 = vmatmul.mubr.msk.bf16.vlgmr.msra.gmra.mrb[4].mxu1 %vm318_vm1, %v301_v20 }
  0x2d   : > { %972 = vmatprep.mubr.msk.bf16.mxu0 %vm1118_vm0, %v1117_v0  ;;  %978 = vmatprep.mubr.msk.bf16.mxu1 %vm1118_vm0, %v1117_v0 }
  0x2e   : > { %971 = vmatpush3.bf16.msra.mxu0 %v565_v9  ;;  %977 = vmatpush3.bf16.msra.mxu1 %v611_v12 }
  0x2f   : > { %982 = vmatprep.subr.bf16.mxu0 %v1117_v0  ;;  %988 = vmatprep.subr.bf16.mxu1 %v1117_v0 }
  0xf7   : > { %v359_v21 = vpop.f32.mrb[0].mxu0  ;;  %v405_v22 = vpop.f32.mrb[0].mxu1 }
  0xf8   : > { %v503_v24 = vmul.f32 0.35355338, %v359_v21  ;;  %v950_v25 = vpop.f32.mrb[1].mxu0  ;;  %v504_v26 = vmul.f32 0.35355338, %v405_v22  ;;  %v956_v27 = vpop.f32.mrb[1].mxu1 }
  0xf9   : > { %v362_v28 = vpop.f32.mrb[2].mxu0  ;;  %v408_v29 = vpop.f32.mrb[2].mxu1 }
  0xfa   : > { %v951_v30 = vpop.f32.mrb[3].mxu0  ;;  %v957_v31 = vpop.f32.mrb[3].mxu1  ;;  %v508_v32 = vadd.f32 %v507_v23, %v503_v24  ;;  %v509_v33 = vadd.f32 %v507_v23, %v504_v26 }
  0xfc   : > { %v512_v34 = vsel %vm318_vm1, %v508_v32, -inf  ;;  %v515_v35 = vsel %vm318_vm1, %v509_v33, -inf }
  0xfd   : > { %513 = vmax.xlane.f32.xlu0 %v512_v34 }
  0xff   : > { %v451_v36 = vpop.f32.mrb[4].mxu0  ;;  %v497_v37 = vpop.f32.mrb[4].mxu1 }
 0x100   : > { %v505_v38 = vmul.f32 0.35355338, %v451_v36  ;;  %v962_v39 = vpop.f32.mrb[5].mxu0  ;;  %v506_v40 = vmul.f32 0.35355338, %v497_v37  ;;  %v968_v41 = vpop.f32.mrb[5].mxu1 }
 0x101   : > { %516 = vmax.xlane.f32.xlu0 %v515_v35  ;;  %v454_v42 = vpop.f32.mrb[6].mxu0  ;;  %v500_v43 = vpop.f32.mrb[6].mxu1 }
 0x102   : > { %v963_v44 = vpop.f32.mrb[7].mxu0  ;;  %v969_v45 = vpop.f32.mrb[7].mxu1  ;;  %v510_v46 = vadd.f32 %v507_v23, %v505_v38  ;;  %v511_v47 = vadd.f32 %v507_v23, %v506_v40 }
 0x104   : > { %v518_v48 = vsel %vm318_vm1, %v510_v46, -inf  ;;  %v521_v49 = vsel %vm318_vm1, %v511_v47, -inf }
 0x105   : > { %519 = vmax.xlane.f32.xlu1 %v518_v48 }
 0x109   : > { %522 = vmax.xlane.f32.xlu1 %v521_v49 }
 0x18a   : > { %v514_v50 = vpop.xlane.xlu0 %513 }
 0x18b   : > { %v524_v51 = vsub.f32 %v508_v32, %v514_v50 }
 0x18d   : > { %v528_v52 = vmul.f32 1.442695, %v524_v51 }
 0x18e   : > { %v517_v53 = vpop.xlane.xlu0 %516 }
 0x18f   : > { %1037 = vpow2.f32 %v528_v52  ;;  %v525_v54 = vsub.f32 %v509_v33, %v517_v53 }
 0x191   : > { %v530_v55 = vmul.f32 1.442695, %v525_v54 }
 0x192   : > { %v520_v56 = vpop.xlane.xlu1 %519 }
 0x193   : > { %1039 = vpow2.f32 %v530_v55  ;;  %v526_v57 = vsub.f32 %v510_v46, %v520_v56 }
 0x195   : > { %v532_v58 = vmul.f32 1.442695, %v526_v57 }
 0x196   : > { %v523_v59 = vpop.xlane.xlu1 %522 }
 0x197   : > { %1041 = vpow2.f32 %v532_v58  ;;  %v527_v60 = vsub.f32 %v511_v47, %v523_v59 }
 0x199   : > { %v1038_v61 = vpop.eup %1037  ;;  %v534_v62 = vmul.f32 1.442695, %v527_v60 }
 0x19a   : > { %v536_v63 = vsel %vm318_vm1, %v1038_v61, 0.0 }
 0x19b   : > { %1043 = vpow2.f32 %v534_v62  ;;  %537 = vadd.xlane.f32.xlu0 %v536_v63 }
 0x19d   : > { %v1040_v1 = vpop.eup %1039 }
 0x19e   : > { %v539_v2 = vsel %vm318_vm1, %v1040_v1, 0.0 }
 0x19f   : > { %540 = vadd.xlane.f32.xlu1 %v539_v2 }
 0x1a1   : > { %v1042_v3 = vpop.eup %1041 }
 0x1a2   : > { %v542_v4 = vsel %vm318_vm1, %v1042_v3, 0.0 }
 0x1a3   : > { %543 = vadd.xlane.f32.xlu0 %v542_v4 }
 0x1a5   : > { %v1044_v5 = vpop.eup %1043 }
 0x1a6   : > { %v545_v6 = vsel %vm318_vm1, %v1044_v5, 0.0 }
 0x1a7   : > { %546 = vadd.xlane.f32.xlu1 %v545_v6 }
 0x228   : > { %v538_v19 = vpop.xlane.xlu0 %537 }
 0x229   : > { %1045 = vrcp.f32 %v538_v19 }
 0x22c   : > { %v541_v20 = vpop.xlane.xlu1 %540 }
 0x22d   : > { %1047 = vrcp.f32 %v541_v20 }
 0x230   : > { %v544_v21 = vpop.xlane.xlu0 %543 }
 0x231   : > { %1049 = vrcp.f32 %v544_v21 }
 0x233   : > { %v1046_v22 = vpop.eup %1045 }
 0x234   : > { %v552_v23 = vmul.f32 %v1046_v22, %v1038_v61  ;;  %v547_v24 = vpop.xlane.xlu1 %546 }
 0x235   : > { %1051 = vrcp.f32 %v547_v24 }
 0x236   : > { %749 = vst.msk [vmem:[%s268_s7] sm:$0xff] %vm318_vm1, %v552_v23  ;;  %v556_v25 = vpack.c.bf16 %v552_v23, %v552_v23 }
 0x237   : > { %v1048_v26 = vpop.eup %1047 }
 0x238   : > { %v553_v27 = vmul.f32 %v1048_v26, %v1040_v1  ;;  %973 = vmatmul.mubr.msk.bf16.vlgmr.msra.gmra.mrb[8].mxu0 %vm318_vm1, %v556_v25 }
 0x239   : > { %983 = vmatpush3.bf16.msra.mxu0 %v657_v15  ;;  %984 = vmatprep.mubr.msk.bf16.mxu0 %vm1118_vm0, %v1117_v0 }
 0x23a   : > { %750 = vst.msk [vmem:[%s268_s7 + $0x8] sm:$0xff] %vm318_vm1, %v553_v27  ;;  %v557_v28 = vpack.c.bf16 %v553_v27, %v553_v27 }
 0x23b   : > { %v1050_v29 = vpop.eup %1049 }
 0x23c   : > { %v554_v30 = vmul.f32 %v1050_v29, %v1042_v3  ;;  %979 = vmatmul.mubr.msk.bf16.vlgmr.msra.gmra.mrb[8].mxu1 %vm318_vm1, %v557_v28 }
 0x23d   : > { %989 = vmatpush3.bf16.msra.mxu1 %v703_v18  ;;  %990 = vmatprep.mubr.msk.bf16.mxu1 %vm1118_vm0, %v1117_v0 }
 0x23e   : > { %751 = vst.msk [vmem:[%s268_s7 + $0x10] sm:$0xff] %vm318_vm1, %v554_v30  ;;  %v558_v31 = vpack.c.bf16 %v554_v30, %v554_v30 }
 0x23f   : > { %v1052_v32 = vpop.eup %1051 }
 0x240   : > { %v555_v33 = vmul.f32 %v1052_v32, %v1044_v5  ;;  %985 = vmatmul.mubr.msk.bf16.vlgmr.msra.gmra.mrb[12].mxu0 %vm318_vm1, %v558_v31 }
 0x242   : > { %752 = vst.msk [vmem:[%s268_s7 + $0x18] sm:$0xff] %vm318_vm1, %v555_v33  ;;  %v559_v34 = vpack.c.bf16 %v555_v33, %v555_v33 }
 0x244   : > { %991 = vmatmul.mubr.msk.bf16.vlgmr.msra.gmra.mrb[12].mxu1 %vm318_vm1, %v559_v34 }
 0x245   : > { %1066 = shalt.err (!%p1063_p3)
}
 0x246   : > { %s1067_s17 = scalar_lea.hbm %s1278_s12, 512  ;;  %s1071_s26 = scalar_lea.hbm %s1338_s5, 1024 }
 0x247   : > { %p1068_p4 = scmp.ne.s32.totalorder %s1278_s12, %s1067_s17  ;;  %p1072_p9 = scmp.lt.u32.totalorder %s1278_s12, %s1338_s5 }
 0x248   : > { %p1073_p10 = scmp.lt.u32.totalorder %s1071_s26, %s1067_s17  ;;  %p1075_p12 = scmp.lt.u32.totalorder %s1067_s17, %s1278_s12 }
 0x249   : > { %p1069_p7 = pnand %p1068_p4, %p1190_p5 }
 0x24a   : > { %p1074_p11 = por %p1073_p10, %p1072_p9 }
 0x24b   : > { %p1070_p8 = pneg %p1069_p7 }
 0x24c   : > { %p1076_p13 = por %p1075_p12, %p1074_p11 }
 0x24e   : > { %p1077_p0 = pnand %p1076_p13, %p1070_p8 }
 0x250   : > { %1080 = shalt.err (!%p1077_p0)
}
 0x251   : > { %s1120_s8 = smov 128   ;;  %s1121_s10 = smov 8  }
 0x252   : > { %994 = dma.vmem_to_hbm [thread:$0]  (%p1190_p5), %s1280_s9, 512, %s1278_s12, %s1284_s13, %s1120_s8, %s1120_s8, %s1121_s10  }
 0x253   : > { %s292_s22 = scalar_lea.vmem %s1337_s4, %s1211_s6 }
 0x30b   : > { %v601_v0 = vpop.f32.mrb[8].mxu0 }
 0x30c   : > { %745 = vst.msk [vmem:[%s292_s22] sm:$0xff] %vm318_vm1, %v601_v0  ;;  %v974_v35 = vpop.f32.mrb[9].mxu0 }
 0x30d   : > { %v604_v36 = vpop.f32.mrb[10].mxu0 }
 0x30e   : > { %v975_v37 = vpop.f32.mrb[11].mxu0 }
 0x30f   : > { %v647_v38 = vpop.f32.mrb[8].mxu1 }
 0x310   : > { %746 = vst.msk [vmem:[%s292_s22 + $0x8] sm:$0xff] %vm318_vm1, %v647_v38  ;;  %v980_v39 = vpop.f32.mrb[9].mxu1 }
 0x311   : > { %v650_v40 = vpop.f32.mrb[10].mxu1 }
 0x312   : > { %v981_v41 = vpop.f32.mrb[11].mxu1 }
 0x313   : > { %v693_v42 = vpop.f32.mrb[12].mxu0 }
 0x314   : > { %747 = vst.msk [vmem:[%s292_s22 + $0x10] sm:$0xff] %vm318_vm1, %v693_v42  ;;  %v986_v43 = vpop.f32.mrb[13].mxu0 }
 0x315   : > { %v696_v44 = vpop.f32.mrb[14].mxu0 }
 0x316   : > { %v987_v45 = vpop.f32.mrb[15].mxu0 }
 0x317   : > { %v739_v46 = vpop.f32.mrb[12].mxu1 }
 0x318   : > { %748 = vst.msk [vmem:[%s292_s22 + $0x18] sm:$0xff] %vm318_vm1, %v739_v46  ;;  %v992_v47 = vpop.f32.mrb[13].mxu1 }
 0x319   : > { %v742_v48 = vpop.f32.mrb[14].mxu1 }
 0x31a   : > { %v993_v49 = vpop.f32.mrb[15].mxu1 }
 0x31b PF: > { %p1000_p5 = scmp.ge.s32.totalorder %s1115_s21, 2  ;;  %s798_s28 = sand.u32 1, %s1103_s18  }
 0x31c   : > { %s799_s6 = scalar_lea.sflag [#allocation3], %s798_s28 }
 0x31d   : > { %p997_p1 = pnand %p1000_p5, %p1194_p6 }
 0x31f   : > { %1098 = dma.done.wait (!%p997_p1), %s799_s6, 512  }
 0x320   : > { %1100 = vsyncadd (!%p997_p1), %s799_s6, 4294966784  ;;  %p16_p2 = scmp.ge.s32.totalorder %s1177_s24, 4   ;;  %s1341_s18 = smov %s1107_s19 }
 0x321   : > { %s1342_s19 = smov %s1111_s20  ;;  %s1343_s20 = smov %s1188_s27 }
 0x322   : > { %s1344_s21 = smov %s1177_s24  ;;  %18 = sbr.rel (!%p16_p2) target bundleno = 3 (0x3), region = 92 }
 0x329   :  { %804 = vsyncpa [#allocation3], 1 }
 0x32a   :  { %806 = vsyncpa [#allocation3 + $0x1], 1 }

</bundles_post_ra>
